<compile_context>
chip_gen: v7x
topology: tpu7x:2x2x1
jax: 0.10.0
libtpu: 0.0.40
codegen_flags: <defaults>
</compile_context>

<pallas_src>
import math
from functools import partial

import jax
import jax.numpy as jnp
from jax.experimental import pallas as pl
from jax.experimental.pallas import tpu as pltpu

LN_EPS = 1e-5
NEG_INF = -1e30


def _default_vmem_limit():
    """Generation-gated VMEM budget: ~80% of per-core VMEM, capped for safety."""
    cap = None
    try:
        cap = getattr(pltpu.get_tpu_info(), "vmem_capacity_bytes", None)
    except Exception:
        cap = None
    if not cap:
        cap = 64 * 1024 * 1024            # conservative fallback: v7x per-TC VMEM
    return min(int(cap * 0.80), 110 * 1024 * 1024)


# ---------------------------------------------------------------------------
# in-kernel helpers (traced into the Pallas bodies)
# ---------------------------------------------------------------------------
def _erf(x):
    # Numerical-Recipes erfc rational approximation (abs err < 1.2e-7) using only
    # exp/mul/add/where -> guaranteed to lower in Mosaic. Matches PyTorch's exact GELU.
    a = jnp.abs(x)
    t = 1.0 / (1.0 + 0.5 * a)
    poly = -1.26551223 + t * (1.00002368 + t * (0.37409196 + t * (0.09678418 + t * (
        -0.18628806 + t * (0.27886807 + t * (-1.13520398 + t * (1.48851587 + t * (
            -0.82215223 + t * 0.17087277))))))))
    erfc = t * jnp.exp(-a * a + poly)
    return jnp.where(x >= 0.0, 1.0 - erfc, erfc - 1.0)


def _gelu(v):  # exact (erf-based) GELU, matching nn.GELU() default
    return 0.5 * v * (1.0 + _erf(v * (1.0 / math.sqrt(2.0))))


def _layernorm(v, g, b):
    mu = jnp.mean(v, axis=-1, keepdims=True)
    var = jnp.mean((v - mu) ** 2, axis=-1, keepdims=True)
    return (v - mu) * jax.lax.rsqrt(var + LN_EPS) * g + b


# ---------------------------------------------------------------------------
# kernel 1: norm1 + RoPE + fused QKV projection  (grid = (B, T/ts))
#           outputs are lane-dense (B, T, D) bf16 slabs for q, k, v
# ---------------------------------------------------------------------------
def _qkv_kernel(x_ref, cos_ref, sins_ref, g1_ref, be1_ref, wqkv_ref, bqkv_ref,
                q_ref, k_ref, v_ref):
    x = x_ref[0].astype(jnp.float32)                       # (TS, D)
    D = x.shape[1]
    half = D // 2

    xn = _layernorm(x, g1_ref[...], be1_ref[...])

    # rotate-half RoPE: roll by D/2 on the lane axis (XLU). The +/- sign of rotate-half is
    # pre-baked into the sin table host-side (sins = sign * sin), so no iota/select here.
    xn = xn * cos_ref[...] + pltpu.roll(xn, shift=half, axis=1) * sins_ref[...]

    # fused QKV: one MXU pass with N = 3D, bf16 operands, f32 accumulation.
    # 1/sqrt(dh) is pre-folded into the Q columns of wqkv/bqkv host-side.
    qkv = (jnp.dot(xn.astype(jnp.bfloat16), wqkv_ref[...],
                   preferred_element_type=jnp.float32)
           + bqkv_ref[...]).astype(jnp.bfloat16)

    # three lane-aligned D-wide slices -> lane-dense slabs (no per-head scatter).
    q_ref[0] = qkv[:, :D]
    k_ref[0] = qkv[:, D:2 * D]
    v_ref[0] = qkv[:, 2 * D:]


# ---------------------------------------------------------------------------
# kernel 2: flash-style attention + out_proj + residuals + FFN
#           grid = (B, T/tq, T/tk), online softmax over the last (kv) axis
# ---------------------------------------------------------------------------
def _attn_ffn_kernel(n_heads, window,
                     x_ref, q_ref, k_ref, v_ref,
                     wo_ref, bo_ref, g2_ref, be2_ref,
                     w1_ref, bf1_ref, w2_ref, bf2_ref,
                     o_ref, m_sc, l_sc, acc_sc):
    qi = pl.program_id(1)
    kv = pl.program_id(2)
    nk = pl.num_programs(2)
    TQ, D = q_ref.shape[1], q_ref.shape[2]
    TK = k_ref.shape[1]
    dh = D // n_heads

    @pl.when(kv == 0)
    def _init():
        m_sc[...] = jnp.full(m_sc.shape, -jnp.inf, m_sc.dtype)
        l_sc[...] = jnp.zeros(l_sc.shape, l_sc.dtype)
        acc_sc[...] = jnp.zeros(acc_sc.shape, acc_sc.dtype)

    # sliding-window bias built in-kernel from iotas (no (T,T) operand in HBM/VMEM).
    # torch bool attn_mask: True (= |j-i| > window) means "may attend" -> bias 0 there.
    row = qi * TQ + jax.lax.broadcasted_iota(jnp.int32, (TQ, TK), 0)
    col = kv * TK + jax.lax.broadcasted_iota(jnp.int32, (TQ, TK), 1)
    bias = jnp.where(jnp.abs(col - row) > window, 0.0, NEG_INF)          # (TQ, TK) f32
    # TODO(synk): gate the bias build on a scalar tile-overlap test (lax.cond) when
    # window << T and tk << T; with the default tk == T it is always needed.

    # head-major (H, tile, dh) views from the lane-dense (tile, D) slabs, built once per
    # step; everything below is batched over heads (bounded live ranges, back-to-back MXU).
    q = q_ref[0]
    k = k_ref[0]
    v = v_ref[0]
    qh = jnp.stack([q[:, h * dh:(h + 1) * dh] for h in range(n_heads)], axis=0)
    kh = jnp.stack([k[:, h * dh:(h + 1) * dh] for h in range(n_heads)], axis=0)
    vh = jnp.stack([v[:, h * dh:(h + 1) * dh] for h in range(n_heads)], axis=0)

    # batched online softmax (1/sqrt(dh) already folded into the Q projection).
    s = jnp.einsum('hqd,hkd->hqk', qh, kh,
                   preferred_element_type=jnp.float32) + bias            # (H, TQ, TK)
    m_prev = m_sc[...]                                                   # (H, TQ, 1)
    m_new = jnp.maximum(m_prev, jnp.max(s, axis=-1, keepdims=True))
    alpha = jnp.exp(m_prev - m_new)
    p = jnp.exp(s - m_new)
    l_sc[...] = alpha * l_sc[...] + jnp.sum(p, axis=-1, keepdims=True)
    acc_sc[...] = alpha * acc_sc[...] + jnp.einsum(
        'hqk,hkd->hqd', p.astype(jnp.bfloat16), vh,
        preferred_element_type=jnp.float32)
    m_sc[...] = m_new

    # after the last K/V tile: normalize, single consolidated out_proj matmul,
    # residuals, LayerNorm2 + FFN, write the output tile.
    @pl.when(kv == nk - 1)
    def _finalize():
        o = acc_sc[...] * pl.reciprocal(l_sc[...], approx=True)          # (H, TQ, dh) f32
        # heads back onto the lane axis -> one 128-deep (TQ, D) @ (D, D) matmul
        o_flat = jnp.concatenate([o[hh] for hh in range(n_heads)], axis=-1)   # (TQ, D)
        att = jnp.dot(o_flat.astype(jnp.bfloat16), wo_ref[...],
                      preferred_element_type=jnp.float32) + bo_ref[...]

        x = x_ref[0].astype(jnp.float32)
        x1 = x + att                    # x = x + h
        ff_in = x1 + att                # ff(x + h) with the *new* x  ==  x0 + 2h
        fn = _layernorm(ff_in, g2_ref[...], be2_ref[...])
        ffh = _gelu(jnp.dot(fn.astype(jnp.bfloat16), w1_ref[...],
                            preferred_element_type=jnp.float32) + bf1_ref[...])
        ffo = jnp.dot(ffh.astype(jnp.bfloat16), w2_ref[...],
                      preferred_element_type=jnp.float32) + bf2_ref[...]
        o_ref[0] = (x1 + ffo).astype(o_ref.dtype)


# ---------------------------------------------------------------------------
# wrapper
# ---------------------------------------------------------------------------
def local_block(x, params, n_heads, window, *, ts=None, tq=None, tk=None,
                vmem_limit_bytes=None):
    (cos, sins, g1, be1, wqkv, bqkv, wo, bo, g2, be2, w1, bf1, w2, bf2) = params
    B, T, D = x.shape
    assert D % n_heads == 0
    ts = T if ts is None else ts
    tq = T if tq is None else tq
    # default tk == T: single kv step when K/V fit in VMEM -> no online-softmax rescale;
    # pass a smaller tk for long sequences.
    tk = T if tk is None else tk
    assert T % ts == 0 and T % tq == 0 and T % tk == 0
    vmem = _default_vmem_limit() if vmem_limit_bytes is None else vmem_limit_bytes

    def cspec2(a):
        nd = a.ndim
        return pl.BlockSpec(a.shape, lambda b, t, _n=nd: (0,) * _n)

    def cspec3(a):
        nd = a.ndim
        return pl.BlockSpec(a.shape, lambda b, i, j, _n=nd: (0,) * _n)
    # TODO(synk): mark the constant-index weight operands pipeline_mode=pl.Buffered(1) to
    # single-buffer them (halves weight VMEM residency at realistic model dims on v7x).

    # ---- pass 1: norm1 + RoPE + fused QKV -> lane-dense (B, T, D) bf16 slabs ----
    slab = jax.ShapeDtypeStruct((B, T, D), jnp.bfloat16)
    q, k, v = pl.pallas_call(
        _qkv_kernel,
        out_shape=(slab, slab, slab),
        grid=(B, T // ts),
        in_specs=[pl.BlockSpec((1, ts, D), lambda b, t: (b, t, 0)),
                  pl.BlockSpec((ts, D), lambda b, t: (t, 0)),
                  pl.BlockSpec((ts, D), lambda b, t: (t, 0)),
                  cspec2(g1), cspec2(be1), cspec2(wqkv), cspec2(bqkv)],
        out_specs=tuple(pl.BlockSpec((1, ts, D), lambda b, t: (b, t, 0))
                        for _ in range(3)),
        compiler_params=pltpu.CompilerParams(
            dimension_semantics=("parallel", "parallel"),
            vmem_limit_bytes=vmem),
    )(x, cos, sins, g1, be1, wqkv, bqkv)

    # ---- pass 2: flash attention + out_proj + residuals + FFN ----
    out = pl.pallas_call(
        partial(_attn_ffn_kernel, n_heads, window),
        out_shape=jax.ShapeDtypeStruct((B, T, D), x.dtype),
        grid=(B, T // tq, T // tk),                       # reduction (kv) axis last
        in_specs=[pl.BlockSpec((1, tq, D), lambda b, i, j: (b, i, 0)),
                  pl.BlockSpec((1, tq, D), lambda b, i, j: (b, i, 0)),
                  pl.BlockSpec((1, tk, D), lambda b, i, j: (b, j, 0)),
                  pl.BlockSpec((1, tk, D), lambda b, i, j: (b, j, 0)),
                  cspec3(wo), cspec3(bo), cspec3(g2), cspec3(be2),
                  cspec3(w1), cspec3(bf1), cspec3(w2), cspec3(bf2)],
        out_specs=pl.BlockSpec((1, tq, D), lambda b, i, j: (b, i, 0)),
        scratch_shapes=[pltpu.VMEM((n_heads, tq, 1), jnp.float32),           # running max
                        pltpu.VMEM((n_heads, tq, 1), jnp.float32),           # running denom
                        pltpu.VMEM((n_heads, tq, D // n_heads), jnp.float32)],  # numerator
        compiler_params=pltpu.CompilerParams(
            dimension_semantics=("parallel", "parallel", "arbitrary"),
            vmem_limit_bytes=vmem),
    )(x, q, k, v, wo, bo, g2, be2, w1, bf1, w2, bf2)
    return out


# ---------------------------------------------------------------------------
# glue: RoPE tables, pure-JAX f32 reference
# ---------------------------------------------------------------------------
def rope_cos_sin(T, D):
    half = D // 2
    inv_freq = 1.0 / (10000.0 ** (jnp.arange(half, dtype=jnp.float32) / half))
    ang = jnp.arange(T, dtype=jnp.float32)[:, None] * inv_freq[None, :]
    cos = jnp.concatenate([jnp.cos(ang), jnp.cos(ang)], axis=-1)
    sin = jnp.concatenate([jnp.sin(ang), jnp.sin(ang)], axis=-1)
    return cos, sin


def reference_forward(x, cos, sin, g1, be1, wqkv, bqkv, wo, bo, g2, be2,
                      w1, bf1, w2, bf2, n_heads, window):
    # NOTE: `wqkv`/`bqkv` here already have 1/sqrt(dh) folded into the Q columns (exactly
    # the weights the kernel consumes), so no explicit score scale is applied below; this
    # is mathematically identical to torch's scaled_dot_product_attention scaling.
    B, T, D = x.shape
    dh = D // n_heads
    half = D // 2

    def ln(v, g, b):
        mu = v.mean(-1, keepdims=True)
        var = ((v - mu) ** 2).mean(-1, keepdims=True)
        return (v - mu) / jnp.sqrt(var + LN_EPS) * g + b

    xn = ln(x, g1, be1)
    xrot = jnp.concatenate([-xn[..., half:], xn[..., :half]], axis=-1)   # rotate-half
    xn = xn * cos + xrot * sin
    qkv = xn @ wqkv + bqkv
    q, k, v = qkv[..., :D], qkv[..., D:2 * D], qkv[..., 2 * D:]
    q = q.reshape(B, T, n_heads, dh).transpose(0, 2, 1, 3)
    k = k.reshape(B, T, n_heads, dh).transpose(0, 2, 1, 3)
    v = v.reshape(B, T, n_heads, dh).transpose(0, 2, 1, 3)
    i = jnp.arange(T)[:, None]
    j = jnp.arange(T)[None, :]
    bias = jnp.where(jnp.abs(j - i) > window, 0.0, NEG_INF)   # True = attend (torch bool mask)
    s = q @ k.transpose(0, 1, 3, 2) + bias
    p = jax.nn.softmax(s, axis=-1)
    att = (p @ v).transpose(0, 2, 1, 3).reshape(B, T, D)
    h = att @ wo + bo
    x1 = x + h
    fn = ln(x1 + h, g2, be2)
    ffo = jax.nn.gelu(fn @ w1 + bf1, approximate=False) @ w2 + bf2
    return x1 + ffo


if __name__ == "__main__":
    B, T, D, H, FF_MULT, WINDOW = 2, 128, 128, 4, 4, 16
    dh = D // H

    key = jax.random.PRNGKey(0)
    keys = jax.random.split(key, 8)
    x = jax.random.normal(keys[0], (B, T, D), jnp.float32)

    def lin(k, din, dout, scale=0.05):
        kw, kb = jax.random.split(k)
        return (jax.random.normal(kw, (din, dout), jnp.float32) * scale,
                jax.random.normal(kb, (1, dout), jnp.float32) * scale)

    wq, bq = lin(keys[1], D, D)
    wk, bk = lin(keys[2], D, D)
    wv, bv = lin(keys[3], D, D)
    wo, bo = lin(keys[4], D, D)
    w1, bf1 = lin(keys[5], D, D * FF_MULT)
    w2, bf2 = lin(keys[6], D * FF_MULT, D)
    g1 = jnp.ones((1, D), jnp.float32)
    be1 = jnp.zeros((1, D), jnp.float32)
    g2 = jnp.ones((1, D), jnp.float32)
    be2 = jnp.zeros((1, D), jnp.float32)

    cos, sin = rope_cos_sin(T, D)

    # host-side weight prep: fold 1/sqrt(dh) into the Q projection, pre-bake the
    # rotate-half sign into the sin table, cast matmul weights to bf16.
    bf16 = jnp.bfloat16
    att_scale = 1.0 / math.sqrt(dh)
    wqkv = jnp.concatenate([wq * att_scale, wk, wv], axis=1).astype(bf16)   # (D, 3D)
    bqkv = jnp.concatenate([bq * att_scale, bk, bv], axis=1)                # (1, 3D) f32
    sign = jnp.concatenate([-jnp.ones((1, D // 2), jnp.float32),
                            jnp.ones((1, D // 2), jnp.float32)], axis=1)
    sins = sin * sign                                                       # signed sin table
    wo_b = wo.astype(bf16)
    w1_b = w1.astype(bf16)
    w2_b = w2.astype(bf16)

    params = (cos, sins, g1, be1, wqkv, bqkv, wo_b, bo, g2, be2, w1_b, bf1, w2_b, bf2)

    out = jax.block_until_ready(local_block(x, params, n_heads=H, window=WINDOW))

    # f32 reference using the same (folded + bf16-quantized) weights, so the comparison
    # isolates kernel structure + bf16 activation/accumulation + approx-reciprocal effects.
    ref = jax.block_until_ready(reference_forward(
        x, cos, sin, g1, be1,
        wqkv.astype(jnp.float32), bqkv,
        wo_b.astype(jnp.float32), bo,
        g2, be2, w1_b.astype(jnp.float32), bf1, w2_b.astype(jnp.float32), bf2,
        n_heads=H, window=WINDOW))

    assert out.shape == (B, T, D) and out.dtype == jnp.float32
    max_err = float(jnp.max(jnp.abs(out - ref)))
    # tolerance accounts for bf16 MXU operands + bf16 activations + approx reciprocal
    assert jnp.allclose(out, ref, atol=3e-2, rtol=3e-2), f"max abs err = {max_err}"
    print("KERNEL_OK")
</pallas_src>

<mosaic_0001>
module attributes {stable_mosaic.version = 11 : i64} {
  func.func @_qkv_kernel(%arg0: i32, %arg1: i32, %arg2: memref<1x128x128xf32, #tpu.memory_space<vmem>>, %arg3: memref<128x128xf32, #tpu.memory_space<vmem>>, %arg4: memref<128x128xf32, #tpu.memory_space<vmem>>, %arg5: memref<1x128xf32, #tpu.memory_space<vmem>>, %arg6: memref<1x128xf32, #tpu.memory_space<vmem>>, %arg7: memref<128x384xbf16, #tpu.memory_space<vmem>>, %arg8: memref<1x384xf32, #tpu.memory_space<vmem>>, %arg9: memref<1x128x128xbf16, #tpu.memory_space<vmem>>, %arg10: memref<1x128x128xbf16, #tpu.memory_space<vmem>>, %arg11: memref<1x128x128xbf16, #tpu.memory_space<vmem>>) attributes {dimension_semantics = [#tpu.dimension_semantics<parallel>, #tpu.dimension_semantics<parallel>], iteration_bounds = array<i64: 2, 1>, scalar_prefetch = 0 : i64, scratch_operands = 0 : i64, tpu.core_type = #tpu.core_type<tc>, window_params = [{transform_indices = @transform_0, window_bounds = array<i64: 1, 128, 128>}, {transform_indices = @transform_1, window_bounds = array<i64: 128, 128>}, {transform_indices = @transform_2, window_bounds = array<i64: 128, 128>}, {pipeline_mode = #tpu.pipeline_mode<synchronous>, transform_indices = @transform_3, window_bounds = array<i64: 1, 128>}, {pipeline_mode = #tpu.pipeline_mode<synchronous>, transform_indices = @transform_4, window_bounds = array<i64: 1, 128>}, {pipeline_mode = #tpu.pipeline_mode<synchronous>, transform_indices = @transform_5, window_bounds = array<i64: 128, 384>}, {pipeline_mode = #tpu.pipeline_mode<synchronous>, transform_indices = @transform_6, window_bounds = array<i64: 1, 384>}, {transform_indices = @transform_7, window_bounds = array<i64: 1, 128, 128>}, {transform_indices = @transform_8, window_bounds = array<i64: 1, 128, 128>}, {transform_indices = @transform_9, window_bounds = array<i64: 1, 128, 128>}]} {
    %c0 = arith.constant 0 : index
    %c0_0 = arith.constant 0 : index
    %c0_1 = arith.constant 0 : index
    %0 = vector.load %arg2[%c0, %c0_0, %c0_1] : memref<1x128x128xf32, #tpu.memory_space<vmem>>, vector<1x128x128xf32>
    %1 = vector.shape_cast %0 : vector<1x128x128xf32> to vector<128x128xf32>
    %c0_2 = arith.constant 0 : index
    %c0_3 = arith.constant 0 : index
    %2 = vector.load %arg5[%c0_2, %c0_3] : memref<1x128xf32, #tpu.memory_space<vmem>>, vector<1x128xf32>
    %c0_4 = arith.constant 0 : index
    %c0_5 = arith.constant 0 : index
    %3 = vector.load %arg6[%c0_4, %c0_5] : memref<1x128xf32, #tpu.memory_space<vmem>>, vector<1x128xf32>
    %cst = arith.constant dense<0.000000e+00> : vector<128xf32>
    %4 = vector.multi_reduction <add>, %1, %cst [1] : vector<128x128xf32> to vector<128xf32>
    %5 = vector.shape_cast %4 : vector<128xf32> to vector<128x1xf32>
    %cst_6 = arith.constant 1.280000e+02 : f32
    %6 = vector.broadcast %cst_6 : f32 to vector<128x1xf32>
    %7 = arith.divf %5, %6 : vector<128x1xf32>
    %8 = vector.broadcast %7 : vector<128x1xf32> to vector<128x128xf32>
    %9 = arith.subf %1, %8 : vector<128x128xf32>
    %10 = arith.mulf %9, %9 : vector<128x128xf32>
    %cst_7 = arith.constant dense<0.000000e+00> : vector<128xf32>
    %11 = vector.multi_reduction <add>, %10, %cst_7 [1] : vector<128x128xf32> to vector<128xf32>
    %12 = vector.shape_cast %11 : vector<128xf32> to vector<128x1xf32>
    %cst_8 = arith.constant 1.280000e+02 : f32
    %13 = vector.broadcast %cst_8 : f32 to vector<128x1xf32>
    %14 = arith.divf %12, %13 : vector<128x1xf32>
    %15 = vector.broadcast %7 : vector<128x1xf32> to vector<128x128xf32>
    %16 = arith.subf %1, %15 : vector<128x128xf32>
    %cst_9 = arith.constant 9.99999974E-6 : f32
    %17 = vector.broadcast %cst_9 : f32 to vector<128x1xf32>
    %18 = arith.addf %14, %17 : vector<128x1xf32>
    %19 = math.rsqrt %18 : vector<128x1xf32>
    %20 = vector.broadcast %19 : vector<128x1xf32> to vector<128x128xf32>
    %21 = arith.mulf %16, %20 : vector<128x128xf32>
    %22 = vector.broadcast %2 : vector<1x128xf32> to vector<128x128xf32>
    %23 = arith.mulf %21, %22 : vector<128x128xf32>
    %24 = vector.broadcast %3 : vector<1x128xf32> to vector<128x128xf32>
    %25 = arith.addf %23, %24 : vector<128x128xf32>
    %c0_10 = arith.constant 0 : index
    %c0_11 = arith.constant 0 : index
    %26 = vector.load %arg3[%c0_10, %c0_11] : memref<128x128xf32, #tpu.memory_space<vmem>>, vector<128x128xf32>
    %27 = arith.mulf %25, %26 : vector<128x128xf32>
    %c64_i32 = arith.constant 64 : i32
    %28 = tpu.dynamic_rotate %25 by %c64_i32 dim 1 : vector<128x128xf32>, i32 -> vector<128x128xf32>
    %c0_12 = arith.constant 0 : index
    %c0_13 = arith.constant 0 : index
    %29 = vector.load %arg4[%c0_12, %c0_13] : memref<128x128xf32, #tpu.memory_space<vmem>>, vector<128x128xf32>
    %30 = arith.mulf %28, %29 : vector<128x128xf32>
    %31 = arith.addf %27, %30 : vector<128x128xf32>
    %32 = arith.truncf %31 : vector<128x128xf32> to vector<128x128xbf16>
    %c0_14 = arith.constant 0 : index
    %c0_15 = arith.constant 0 : index
    %33 = vector.load %arg7[%c0_14, %c0_15] : memref<128x384xbf16, #tpu.memory_space<vmem>>, vector<128x384xbf16>
    %cst_16 = arith.constant dense<0.000000e+00> : vector<128x384xf32>
    %34 = tpu.matmul %32, %33, %cst_16 {dimension_numbers = #tpu.dot_dimension_numbers<[1], [0], [0], [1], [0, 0, 1, 1], [], []>} : vector<128x128xbf16>, vector<128x384xbf16>, vector<128x384xf32> -> vector<128x384xf32>
    %c0_17 = arith.constant 0 : index
    %c0_18 = arith.constant 0 : index
    %35 = vector.load %arg8[%c0_17, %c0_18] : memref<1x384xf32, #tpu.memory_space<vmem>>, vector<1x384xf32>
    %36 = vector.broadcast %35 : vector<1x384xf32> to vector<128x384xf32>
    %37 = arith.addf %34, %36 : vector<128x384xf32>
    %38 = arith.truncf %37 : vector<128x384xf32> to vector<128x384xbf16>
    %39 = vector.extract_strided_slice %38 {offsets = [0, 0], sizes = [128, 128], strides = [1, 1]} : vector<128x384xbf16> to vector<128x128xbf16>
    %c0_19 = arith.constant 0 : index
    %c0_20 = arith.constant 0 : index
    %c0_21 = arith.constant 0 : index
    %40 = vector.load %arg9[%c0_19, %c0_20, %c0_21] : memref<1x128x128xbf16, #tpu.memory_space<vmem>>, vector<1x128x128xbf16>
    %41 = vector.shape_cast %40 : vector<1x128x128xbf16> to vector<128x128xbf16>
    %42 = vector.shape_cast %39 : vector<128x128xbf16> to vector<1x128x128xbf16>
    tpu.vector_store %arg9[%c0_19, %c0_20, %c0_21], %42 {strides = array<i32>} : memref<1x128x128xbf16, #tpu.memory_space<vmem>>, vector<1x128x128xbf16>,
    %43 = vector.extract_strided_slice %38 {offsets = [0, 128], sizes = [128, 128], strides = [1, 1]} : vector<128x384xbf16> to vector<128x128xbf16>
    %c0_22 = arith.constant 0 : index
    %c0_23 = arith.constant 0 : index
    %c0_24 = arith.constant 0 : index
    %44 = vector.load %arg10[%c0_22, %c0_23, %c0_24] : memref<1x128x128xbf16, #tpu.memory_space<vmem>>, vector<1x128x128xbf16>
    %45 = vector.shape_cast %44 : vector<1x128x128xbf16> to vector<128x128xbf16>
    %46 = vector.shape_cast %43 : vector<128x128xbf16> to vector<1x128x128xbf16>
    tpu.vector_store %arg10[%c0_22, %c0_23, %c0_24], %46 {strides = array<i32>} : memref<1x128x128xbf16, #tpu.memory_space<vmem>>, vector<1x128x128xbf16>,
    %47 = vector.extract_strided_slice %38 {offsets = [0, 256], sizes = [128, 128], strides = [1, 1]} : vector<128x384xbf16> to vector<128x128xbf16>
    %c0_25 = arith.constant 0 : index
    %c0_26 = arith.constant 0 : index
    %c0_27 = arith.constant 0 : index
    %48 = vector.load %arg11[%c0_25, %c0_26, %c0_27] : memref<1x128x128xbf16, #tpu.memory_space<vmem>>, vector<1x128x128xbf16>
    %49 = vector.shape_cast %48 : vector<1x128x128xbf16> to vector<128x128xbf16>
    %50 = vector.shape_cast %47 : vector<128x128xbf16> to vector<1x128x128xbf16>
    tpu.vector_store %arg11[%c0_25, %c0_26, %c0_27], %50 {strides = array<i32>} : memref<1x128x128xbf16, #tpu.memory_space<vmem>>, vector<1x128x128xbf16>,
    return
  }
  func.func @transform_0(%arg0: i32, %arg1: i32) -> (i32, i32, i32) {
    %c0_i32 = arith.constant 0 : i32
    %c0_i32_0 = arith.constant 0 : i32
    return %arg0, %arg1, %c0_i32 : i32, i32, i32
  }
  func.func @transform_1(%arg0: i32, %arg1: i32) -> (i32, i32) {
    %c0_i32 = arith.constant 0 : i32
    %c0_i32_0 = arith.constant 0 : i32
    return %arg1, %c0_i32 : i32, i32
  }
  func.func @transform_2(%arg0: i32, %arg1: i32) -> (i32, i32) {
    %c0_i32 = arith.constant 0 : i32
    %c0_i32_0 = arith.constant 0 : i32
    return %arg1, %c0_i32 : i32, i32
  }
  func.func @transform_3(%arg0: i32, %arg1: i32) -> (i32, i32) {
    %c0_i32 = arith.constant 0 : i32
    %c0_i32_0 = arith.constant 0 : i32
    %c0_i32_1 = arith.constant 0 : i32
    return %c0_i32, %c0_i32_0 : i32, i32
  }
  func.func @transform_4(%arg0: i32, %arg1: i32) -> (i32, i32) {
    %c0_i32 = arith.constant 0 : i32
    %c0_i32_0 = arith.constant 0 : i32
    %c0_i32_1 = arith.constant 0 : i32
    return %c0_i32, %c0_i32_0 : i32, i32
  }
  func.func @transform_5(%arg0: i32, %arg1: i32) -> (i32, i32) {
    %c0_i32 = arith.constant 0 : i32
    %c0_i32_0 = arith.constant 0 : i32
    %c0_i32_1 = arith.constant 0 : i32
    return %c0_i32, %c0_i32_0 : i32, i32
  }
  func.func @transform_6(%arg0: i32, %arg1: i32) -> (i32, i32) {
    %c0_i32 = arith.constant 0 : i32
    %c0_i32_0 = arith.constant 0 : i32
    %c0_i32_1 = arith.constant 0 : i32
    return %c0_i32, %c0_i32_0 : i32, i32
  }
  func.func @transform_7(%arg0: i32, %arg1: i32) -> (i32, i32, i32) {
    %c0_i32 = arith.constant 0 : i32
    %c0_i32_0 = arith.constant 0 : i32
    return %arg0, %arg1, %c0_i32 : i32, i32, i32
  }
  func.func @transform_8(%arg0: i32, %arg1: i32) -> (i32, i32, i32) {
    %c0_i32 = arith.constant 0 : i32
    %c0_i32_0 = arith.constant 0 : i32
    return %arg0, %arg1, %c0_i32 : i32, i32, i32
  }
  func.func @transform_9(%arg0: i32, %arg1: i32) -> (i32, i32, i32) {
    %c0_i32 = arith.constant 0 : i32
    %c0_i32_0 = arith.constant 0 : i32
    return %arg0, %arg1, %c0_i32 : i32, i32, i32
  }
}

</mosaic_0001>

<bundles_post_ra>
// kernel: tpu_custom_call.1
= control target key start
LH: loop header
LB: loop body
LE: loop exit
PB: predicated region body
PF: predicated region fallthrough
CT: control target
= control target key end

     0   :  { %s3246_s0 = inlined_call_operand.hbm [shape: f32[2,128,128], index: 0, kind: input, shape index: {}]   ;;  %s3247_s1 = inlined_call_operand.hbm [shape: f32[128,128], index: 1, kind: input, shape index: {}]   ;;  %s3248_s2 = inlined_call_operand.hbm [shape: f32[128,128], index: 2, kind: input, shape index: {}]   ;;  %s3249_s3 = inlined_call_operand.vmem [shape: f32[1,128], index: 3, kind: input, shape index: {}]   ;;  %s3250_s4 = inlined_call_operand.vmem [shape: f32[1,128], index: 4, kind: input, shape index: {}]   ;;  %s3251_s5 = inlined_call_operand.hbm [shape: bf16[128,384], index: 5, kind: input, shape index: {}]   ;;  %s3252_s6 = inlined_call_operand.vmem [shape: f32[1,384], index: 6, kind: input, shape index: {}]   ;;  %s3253_s7 = inlined_call_operand.hbm [shape: bf16[2,128,128], index: 7, kind: output, shape index: {0}]   ;;  %s3254_s8 = inlined_call_operand.hbm [shape: bf16[2,128,128], index: 8, kind: output, shape index: {1}]   ;;  %s3255_s9 = inlined_call_operand.hbm [shape: bf16[2,128,128], index: 9, kind: output, shape index: {2}]  }
   0x1   :  { %3267 = sst [smem:[#allocation21_spill]] %s3246_s0 }
   0x2   :  { %3268 = sst [smem:[#allocation22_spill]] %s3247_s1 }
   0x3   :  { %3269 = sst [smem:[#allocation23_spill]] %s3248_s2 }
   0x4   :  { %3270 = sst [smem:[#allocation24_spill]] %s3249_s3 }
   0x5   :  { %3271 = sst [smem:[#allocation25_spill]] %s3250_s4 }
   0x6   :  { %3272 = sst [smem:[#allocation26_spill]] %s3253_s7 }
   0x7   :  { %3273 = sst [smem:[#allocation27_spill]] %s3254_s8 }
   0x8   :  { %3274 = sst [smem:[#allocation28_spill]] %s3255_s9 }
   0x9   :  { %15 = vsyncpa [#allocation3], 0 }
   0xa   :  { %17 = vsyncpa [#allocation3 + $0x1], 0 }
   0xb   :  { %18 = vsyncpa [#allocation6], 0 }
   0xc   :  { %19 = vsyncpa [#allocation9], 0 }
   0xd   :  { %20 = vsyncpa [#allocation4], 0 }
   0xe   :  { %22 = vsyncpa [#allocation4 + $0x1], 0 }
   0xf   :  { %23 = vsyncpa [#allocation12], 0 }
  0x10   :  { %25 = vsyncpa [#allocation12 + $0x1], 0  ;;  %s2541_s30 = smov 0   ;;  %s2543_s10 = smov 0  }
  0x11   :  { %s2545_s11 = smov 0   ;;  %s2547_s12 = smov 0  }
  0x12   :  { %s2549_s13 = smov 0   ;;  %s2551_s14 = smov 0  }
  0x13 LB: > { %3275 = sst [smem:[#allocation19_spill]] %s2455_s30  ;;  %s2572_s15 = sadd.s32 4294967295, %s2475_s14   ;;  %s2475_s14 = sphi %s2551_s14, %s31_s14   ;;  %s2471_s13 = sphi %s2549_s13, %s3311_s13   ;;  %s2467_s12 = sphi %s2547_s12, %s3310_s12   ;;  %s2463_s11 = sphi %s2545_s11, %s3309_s11   ;;  %s2459_s10 = sphi %s2543_s10, %s3308_s10   ;;  %s2455_s30 = sphi %s2541_s30, %s3307_s30  }
  0x14   : > { %s3256_s16 = sadd.s32 4294967294, %s2475_s14   ;;  %p65_p0 = scmp.ne.s32.totalorder %s2459_s10, %s2455_s30 }
  0x15   : > { %p3258_p1 = scmp.eq.s32.totalorder %s2572_s15, 0  ;;  %p233_p3 = scmp.eq.s32.totalorder %s3256_s16, 1 }
  0x16   : > { %p1695_p5 = scmp.ge.s32.totalorder %s2475_s14, 1  ;;  %p296_p7 = scmp.lt.s32.totalorder %s2475_s14, 3 }
  0x17   : > { %p2583_p4 = por %p3258_p1, %p65_p0  ;;  %p2588_p6 = por %p233_p3, %p65_p0 }
  0x18   : > { %p2593_p8 = pnand %p1695_p5, %p296_p7  ;;  %s2477_s20 = smov [#allocation5]  }
  0x19   : > { %s3276_s17 = scalar_select %p2583_p4, 1, 0 }
  0x1a   : > { %s3277_s18 = scalar_select %p2588_p6, 1, 0 }
  0x1b   : > { %s3279_s19 = scalar_select %p2593_p8, 1, 0 }
  0x1c   : > { %3278 = sst [smem:[#allocation20_spill]] %s3277_s18  ;;  %s311_s21 = sshll.u32 %s2477_s20, 4  ;;  %s2597_s21 = int_to_ptr.vmem [resolvable:$true] %s311_s21 }
  0x1d   : > { %p2057_p9 = pneg %p2593_p8  ;;  %s2478_s23 = smov [#allocation7]  }
  0x1e   : > { %s327_s24 = sshll.u32 %s2478_s23, 4  ;;  %s2479_s25 = smov [#allocation8]   ;;  %s2608_s24 = int_to_ptr.vmem [resolvable:$true] %s327_s24 }
  0x1f   : > { %p2604_p11 = pnand %p2057_p9, %p3258_p1  ;;  %s2610_s26 = sshll.u32 %s2479_s25, 4  ;;  %s347_s26 = int_to_ptr.vmem [resolvable:$true] %s2610_s26 }
  0x20   : > { %s3281_s1 = sld [smem:[#allocation22_spill]] }
  0x21   : > { %p2620_p13 = pneg %p2604_p11 }
  0x26   : > { %s2211_s29 = scalar_lea.hbm %s3281_s1, 2048 }
  0x27   : > { %p2212_p12 = scmp.ne.s32.totalorder %s3281_s1, %s2211_s29  ;;  %p2218_p5 = scmp.lt.u32.totalorder %s2211_s29, %s3281_s1 }
  0x29   : > { %p2214_p0 = pnand %p2620_p13, %p2212_p12 }
  0x2b   : > { %p2215_p3 = pneg %p2214_p0 }
  0x2d   : > { %p2220_p7 = pnand %p2218_p5, %p2215_p3 }
  0x2f   : > { %2223 = shalt.err (!%p2220_p7)
}
  0x30   : > { %s2224_s16 = scalar_lea.vmem %s2597_s21, 2048  ;;  %p2232_p2 = scmp.lt.s32.totalorder %s2597_s21, %s2597_s21 }
  0x31   : > { %p2225_p9 = scmp.ne.s32.totalorder %s2597_s21, %s2224_s16  ;;  %p2233_p6 = scmp.lt.s32.totalorder %s2224_s16, %s2224_s16 }
  0x33   : > { %p2227_p10 = pnand %p2225_p9, %p2620_p13  ;;  %p2234_p12 = por %p2233_p6, %p2232_p2 }
  0x35   : > { %p2228_p1 = pneg %p2227_p10 }
  0x37   : > { %p2235_p0 = pnand %p2234_p12, %p2228_p1 }
  0x39   : > { %2238 = shalt.err (!%p2235_p0)
}
  0x3a   : > { %s2480_s27 = smov 128   ;;  %s2481_s28 = smov 8  }
  0x3b   : > { %2060 = dma.hbm_to_vmem [thread:$0]  (!%p2604_p11), %s3281_s1, 2048, %s2597_s21, [#allocation6], %s2480_s27, %s2480_s27, %s2481_s28  }
  0x3c   : > { %s3283_s2 = sld [smem:[#allocation23_spill]] }
  0x42   : > { %s2239_s16 = scalar_lea.hbm %s3283_s2, 2048 }
  0x43   : > { %p2240_p1 = scmp.ne.s32.totalorder %s3283_s2, %s2239_s16  ;;  %p2246_p10 = scmp.lt.u32.totalorder %s2239_s16, %s3283_s2 }
  0x45   : > { %p2242_p2 = pnand %p2240_p1, %p2620_p13 }
  0x47   : > { %p2243_p6 = pneg %p2242_p2 }
  0x49   : > { %p2248_p3 = pnand %p2246_p10, %p2243_p6 }
  0x4b   : > { %2251 = shalt.err (!%p2248_p3)
}
  0x4c   : > { %s2252_s21 = scalar_lea.vmem %s2608_s24, 2048  ;;  %p2260_p12 = scmp.lt.s32.totalorder %s2608_s24, %s2608_s24 }
  0x4d   : > { %p2253_p5 = scmp.ne.s32.totalorder %s2608_s24, %s2252_s21  ;;  %p2261_p0 = scmp.lt.s32.totalorder %s2252_s21, %s2252_s21 }
  0x4f   : > { %p2255_p7 = pnand %p2253_p5, %p2620_p13  ;;  %p2262_p1 = por %p2261_p0, %p2260_p12 }
  0x51   : > { %p2256_p9 = pneg %p2255_p7 }
  0x53   : > { %p2263_p2 = pnand %p2262_p1, %p2256_p9 }
  0x55   : > { %2266 = shalt.err (!%p2263_p2)
}
  0x56   : > { %2063 = dma.hbm_to_vmem [thread:$0]  (!%p2604_p11), %s3283_s2, 2048, %s2608_s24, [#allocation6], %s2480_s27, %s2480_s27, %s2481_s28  }
  0x57   : > { %s2267_s29 = scalar_lea.hbm %s3251_s5, 3072 }
  0x58   : > { %p2268_p6 = scmp.ne.s32.totalorder %s3251_s5, %s2267_s29  ;;  %p2274_p5 = scmp.lt.u32.totalorder %s2267_s29, %s3251_s5 }
  0x5a   : > { %p2270_p10 = pnand %p2268_p6, %p2620_p13 }
  0x5c   : > { %p2271_p3 = pneg %p2270_p10 }
  0x5e   : > { %p2276_p7 = pnand %p2274_p5, %p2271_p3 }
  0x60   : > { %2279 = shalt.err (!%p2276_p7)
}
  0x61   : > { %s2280_s21 = scalar_lea.vmem %s347_s26, 3072  ;;  %p2288_p1 = scmp.lt.s32.totalorder %s347_s26, %s347_s26 }
  0x62   : > { %p2281_p9 = scmp.ne.s32.totalorder %s347_s26, %s2280_s21  ;;  %p2289_p2 = scmp.lt.s32.totalorder %s2280_s21, %s2280_s21 }
  0x64   : > { %p2283_p12 = pnand %p2281_p9, %p2620_p13  ;;  %p2290_p4 = por %p2289_p2, %p2288_p1 }
  0x66   : > { %p2284_p0 = pneg %p2283_p12 }
  0x68   : > { %p2291_p8 = pnand %p2290_p4, %p2284_p0 }
  0x6a   : > { %2294 = shalt.err (!%p2291_p8)
}
  0x6b   : > { %s2482_s24 = smov 192   ;;  %s2483_s18 = smov 12  }
  0x6c   : > { %2066 = dma.hbm_to_vmem [thread:$0]  (!%p2604_p11), %s3251_s5, 3072, %s347_s26, [#allocation9], %s2482_s24, %s2482_s24, %s2483_s18  }
  0x6d   : > { %s52_s9 = sadd.s32 1, %s2463_s11  ;;  %s43_s30 = sadd.s32 1, %s2471_s13 }
  0x6e   : > { %p59_p4 = scmp.ne.s32.totalorder %s2463_s11, %s2459_s10  ;;  %p45_p8 = scmp.ge.s32.totalorder %s43_s30, 2 }
  0x6f   : > { %p60_p13 = scmp.eq.s32.totalorder %s2475_s14, 0  ;;  %p3284_p6 = scmp.eq.s32.totalorder %s2572_s15, 1 }
  0x70   : > { %p2084_p3 = scmp.lt.s32.totalorder %s2475_s14, 2  ;;  %s3313_s30 = smov (%p45_p8, %s43_s30), 0 }
  0x71   : > { %p2696_p10 = por %p3284_p6, %p59_p4  ;;  %p61_p5 = por %p60_p13, %p59_p4 }
  0x72   : > { %s363_s22 = sand.u32 1, %s2463_s11   ;;  %s47_s20 = ssub.s32 %s2471_s13, %s3313_s30 }
  0x73   : > { %p50_p7 = scmp.eq.s32.totalorder %s47_s20, 0  ;;  %s1700_s26 = sshll.u32 %s363_s22, 7 }
  0x74   : > { %s1796_s23 = sshll.u32 %s2471_s13, 11  ;;  %s3286_s0 = sld [smem:[#allocation21_spill]] }
  0x75   : > { %s2708_s25 = scalar_select %p50_p7, %s2463_s11, %s52_s9  }
  0x76   : > { %s367_s18 = scalar_lea.vmem [#allocation2], %s1700_s26  ;;  %p2719_p11 = pnand %p2084_p3, %p61_p5 }
  0x77   : > { %s376_s7 = sshll.u32 %s367_s18, 4  ;;  %s2723_s9 = scalar_lea.sflag [#allocation3], %s363_s22  ;;  %s2715_s7 = int_to_ptr.vmem [resolvable:$true] %s376_s7 }
  0x78   : > { %p2297_p12 = pneg %p2719_p11 }
  0x7a   : > { %s2713_s24 = scalar_lea.hbm %s3286_s0, %s1796_s23  ;;  %s2300_s16 = scalar_lea.hbm %s3286_s0, 4096 }
  0x7b   : > { %s2295_s20 = scalar_lea.hbm %s2713_s24, 2048  ;;  %p2301_p2 = scmp.lt.u32.totalorder %s2713_s24, %s3286_s0 }
  0x7c   : > { %p2296_p9 = scmp.ne.s32.totalorder %s2713_s24, %s2295_s20  ;;  %p2302_p4 = scmp.lt.u32.totalorder %s2300_s16, %s2295_s20 }
  0x7d   : > { %p2304_p13 = scmp.lt.u32.totalorder %s2295_s20, %s2713_s24 }
  0x7e   : > { %p2298_p0 = pnand %p2297_p12, %p2296_p9  ;;  %p2303_p8 = por %p2302_p4, %p2301_p2 }
  0x80   : > { %p2299_p1 = pneg %p2298_p0  ;;  %p2305_p6 = por %p2304_p13, %p2303_p8 }
  0x82   : > { %p2306_p3 = pnand %p2305_p6, %p2299_p1 }
  0x84   : > { %2309 = shalt.err (!%p2306_p3)
}
  0x85   : > { %s2310_s22 = scalar_lea.vmem %s2715_s7, 2048  ;;  %s2484_s26 = smov [#allocation2]  }
  0x86   : > { %p2311_p5 = scmp.ne.s32.totalorder %s2715_s7, %s2310_s22  ;;  %s2315_s23 = sshll.u32 %s2484_s26, 4  ;;  %s2316_s23 = int_to_ptr.vmem [resolvable:$false] %s2315_s23 }
  0x87   : > { %s2317_s21 = scalar_lea.vmem %s2316_s23, 4096  ;;  %p2318_p0 = scmp.lt.s32.totalorder %s2715_s7, %s2316_s23 }
  0x88   : > { %p2313_p7 = pnand %p2311_p5, %p2297_p12  ;;  %p2319_p2 = scmp.lt.s32.totalorder %s2317_s21, %s2310_s22 }
  0x8a   : > { %p2314_p9 = pneg %p2313_p7  ;;  %p2320_p4 = por %p2319_p2, %p2318_p0 }
  0x8c   : > { %p2321_p8 = pnand %p2320_p4, %p2314_p9 }
  0x8e   : > { %2324 = shalt.err (!%p2321_p8)
}
  0x8f   : > { %2070 = dma.hbm_to_vmem [thread:$0]  (!%p2719_p11), %s2713_s24, 2048, %s2715_s7, %s2723_s9, %s2480_s27, %s2480_s27, %s2481_s28  }
  0x90   : > { %p3288_p12 = scmp.ne.s32.totalorder %s3279_s19, 0 }
  0x91   : > { %s2757_s20 = sand.u32 (!%p3288_p12), 1, %s2459_s10   ;;  %p3289_p1 = scmp.ne.s32.totalorder (!%p3288_p12), %s3276_s17, 0 }
  0x92   : > { %388 = sbr.rel (%p3288_p12) target bundleno = 933 (0x3a5), region = 48  ;;  %s1704_s16 = sshll.u32 (!%p3288_p12), %s2757_s20, 7 }
  0x93   : > { %s391_s18 = scalar_lea.sflag (!%p3288_p12), [#allocation3], %s2757_s20  ;;  %s2761_s22 = scalar_lea.vmem (!%p3288_p12), [#allocation2], %s1704_s16 }
  0x99   : > { %2434 = dma.done.wait (%p3289_p1), %s391_s18, 2048  }
  0x9a   : > { %2436 = vsyncadd (%p3289_p1), %s391_s18, 4294965248  ;;  %p3290_p11 = scmp.eq.s32.totalorder %s2572_s15, 0 }
  0x9c   : > { %2438 = dma.done.wait (%p3290_p11), [#allocation6], 4096   ;;  %p3291_p13 = pmov %p3290_p11 }
  0x9d   : > { %p3292_p6 = pmov %p3290_p11 }
  0x9e   : > { %2440 = vsyncadd (%p3291_p13), [#allocation6], 4294963200 }
  0x9f   : > { %2442 = dma.done.wait (%p3292_p6), [#allocation9], 3072   ;;  %p3293_p3 = pmov %p3292_p6 }
  0xa0   : > { %v458_v0 = vld [vmem:[%s2761_s22] sm:$0xff]  ;;  %v460_v1 = vld [vmem:[%s2761_s22 + $0x10] sm:$0xff]  ;;  %v459_v2 = vld [vmem:[%s2761_s22 + $0x8] sm:$0xff]  ;;  %s3294_s3 = sld [smem:[#allocation24_spill]]  ;;  %s3295_s4 = sld [smem:[#allocation25_spill]] }
  0xa1   : > { %2444 = vsyncadd (%p3293_p3), [#allocation9], 4294964224  ;;  %476 = vadd.xlane.f32.xlu0 %v458_v0  ;;  %480 = vadd.xlane.f32.xlu1 %v460_v1  ;;  %v461_v3 = vld [vmem:[%s2761_s22 + $0x18] sm:$0xff]  ;;  %v462_v4 = vld [vmem:[%s2761_s22 + $0x20] sm:$0xff]  ;;  %s3265_s24 = smov 64   ;;  %s3029_s9 = sshll.u32 %s2757_s20, 6 }
  0xa2   : > { %v463_v5 = vld [vmem:[%s2761_s22 + $0x28] sm:$0xff]  ;;  %v464_v6 = vld [vmem:[%s2761_s22 + $0x30] sm:$0xff]  ;;  %v465_v7 = vld [vmem:[%s2761_s22 + $0x38] sm:$0xff]  ;;  %s3036_s26 = scalar_lea.vmem [#allocation10], %s3029_s9  ;;  %s3042_s23 = scalar_lea.vmem [#allocation11], %s3029_s9 }
  0xa3   : > { %v466_v8 = vld [vmem:[%s2761_s22 + $0x40] sm:$0xff]  ;;  %v467_v9 = vld [vmem:[%s2761_s22 + $0x48] sm:$0xff]  ;;  %v468_v10 = vld [vmem:[%s2761_s22 + $0x50] sm:$0xff]  ;;  %s3055_s21 = scalar_lea.vmem [#allocation13], %s3029_s9  ;;  %s1470_s16 = sshll.u32 %s3036_s26, 4  ;;  %s3110_s16 = int_to_ptr.vmem [resolvable:$true] %s1470_s16 }
  0xa4   : > { %v2787_v11 = vld [vmem:[%s2761_s22 + $0x58] sm:$0xff]  ;;  %v2791_v12 = vld [vmem:[%s2761_s22 + $0x60] sm:$0xff]  ;;  %v2794_v13 = vld [vmem:[%s2761_s22 + $0x68] sm:$0xff]  ;;  %s1488_s18 = sshll.u32 %s3042_s23, 4  ;;  %s1506_s19 = sshll.u32 %s3055_s21, 4  ;;  %s3113_s18 = int_to_ptr.vmem [resolvable:$true] %s1488_s18  ;;  %s3131_s19 = int_to_ptr.vmem [resolvable:$true] %s1506_s19 }
  0xa5   : > { %478 = vadd.xlane.f32.xlu0 %v459_v2  ;;  %482 = vadd.xlane.f32.xlu1 %v461_v3  ;;  %v2799_v14 = vld [vmem:[%s2761_s22 + $0x70] sm:$0xff]  ;;  %v2802_v15 = vld [vmem:[%s2761_s22 + $0x78] sm:$0xff]  ;;  %s1845_s22 = sshll.u32 %s2467_s12, 10  ;;  %s3296_s28 = sld [smem:[#allocation26_spill]] }
  0xa6   : > { %s3298_s1 = sld [smem:[#allocation28_spill]]  ;;  %s2325_s12 = scalar_lea.vmem %s3110_s16, 1024 }
  0xa7   : > { %p2326_p5 = scmp.ne.s32.totalorder %s3110_s16, %s2325_s12  ;;  %s2487_s27 = smov [#allocation10]  }
  0xa9   : > { %484 = vadd.xlane.f32.xlu0 %v462_v4  ;;  %486 = vadd.xlane.f32.xlu1 %v463_v5  ;;  %p2327_p7 = pnand %p2326_p5, %p2696_p10 }
  0xab   : > { %s3124_s7 = scalar_lea.hbm %s3296_s28, %s1845_s22  ;;  %p2328_p9 = pneg %p2327_p7 }
  0xac   : > { %s3137_s2 = scalar_lea.hbm %s3298_s1, %s1845_s22 }
  0xad   : > { %488 = vadd.xlane.f32.xlu0 %v464_v6  ;;  %490 = vadd.xlane.f32.xlu1 %v465_v7 }
  0xb1   : > { %492 = vadd.xlane.f32.xlu0 %v466_v8  ;;  %494 = vadd.xlane.f32.xlu1 %v467_v9 }
  0xb5   : > { %496 = vadd.xlane.f32.xlu0 %v468_v10  ;;  %498 = vadd.xlane.f32.xlu1 %v2787_v11 }
  0xb9   : > { %500 = vadd.xlane.f32.xlu0 %v2791_v12  ;;  %502 = vadd.xlane.f32.xlu1 %v2794_v13 }
  0xbd   : > { %504 = vadd.xlane.f32.xlu0 %v2799_v14  ;;  %506 = vadd.xlane.f32.xlu1 %v2802_v15 }
 0x12e   : > { %v477_v16 = vpop.xlane.xlu0 %476  ;;  %v481_v17 = vpop.xlane.xlu1 %480 }
 0x12f   : > { %v509_v18 = vmul.f32 0.0078125, %v477_v16  ;;  %v511_v19 = vmul.f32 0.0078125, %v481_v17 }
 0x131   : > { %v2806_v20 = vsub.f32 %v458_v0, %v509_v18  ;;  %v2808_v21 = vsub.f32 %v460_v1, %v511_v19  ;;  %v2147_v18 = vld [vmem:[#allocation8 + $0x4] ss:$12 sps:$4 sm:$0xff]   ;;  %v2150_v19 = vld [vmem:[#allocation8 + $0x1c] ss:$12 sps:$4 sm:$0xff]  }
 0x132   : > { %v479_v22 = vpop.xlane.xlu0 %478  ;;  %v483_v23 = vpop.xlane.xlu1 %482  ;;  %994 = vmatprep.subr.bf16.mxu0 %v2147_v18 }
 0x133   : > { %v510_v24 = vmul.f32 0.0078125, %v479_v22  ;;  %v541_v25 = vmul.f32 %v2806_v20, %v2806_v20  ;;  %v512_v26 = vmul.f32 0.0078125, %v483_v23  ;;  %v543_v29 = vmul.f32 %v2808_v21, %v2808_v21  ;;  %v2155_v22 = vld [vmem:[#allocation8 + $0x8] ss:$12 sps:$4 sm:$0xff]   ;;  %v2159_v23 = vld [vmem:[#allocation8 + $0x20] ss:$12 sps:$4 sm:$0xff]  }
 0x134   : > { %2005 = vmatprep.subr.bf16.mxu1 %v2155_v22 }
 0x135   : > { %v2812_v27 = vsub.f32 %v459_v2, %v510_v24  ;;  %557 = vadd.xlane.f32.xlu0 %v541_v25  ;;  %v2814_v28 = vsub.f32 %v461_v3, %v512_v26  ;;  %v2153_v24 = vld [vmem:[#allocation8 + $0x34] ss:$12 sps:$4 sm:$0xff]   ;;  %2006 = vmatpush3.bf16.msra.mxu1 %v2155_v22  ;;  %v2163_v25 = vld [vmem:[#allocation8 + $0x38] ss:$12 sps:$4 sm:$0xff]   ;;  %v2156_v26 = vld [vmem:[#allocation8 + $0x30] ss:$12 sps:$4 sm:$0xff]  }
 0x136   : > { %v485_v30 = vpop.xlane.xlu0 %484  ;;  %v487_v31 = vpop.xlane.xlu1 %486  ;;  %2007 = vmatprep.subr.bf16.mxu1 %v2159_v23 }
 0x137   : > { %v513_v32 = vmul.f32 0.0078125, %v485_v30  ;;  %v542_v33 = vmul.f32 %v2812_v27, %v2812_v27  ;;  %v514_v34 = vmul.f32 0.0078125, %v487_v31  ;;  %v544_v37 = vmul.f32 %v2814_v28, %v2814_v28  ;;  %v2167_v30 = vld [vmem:[#allocation8 + $0x50] ss:$12 sps:$4 sm:$0xff]   ;;  %v2160_v31 = vld [vmem:[#allocation8 + $0x48] ss:$12 sps:$4 sm:$0xff]  }
 0x139   : > { %v2820_v35 = vsub.f32 %v462_v4, %v513_v32  ;;  %561 = vadd.xlane.f32.xlu0 %v543_v29  ;;  %559 = vadd.xlane.f32.xlu1 %v542_v33  ;;  %v2822_v36 = vsub.f32 %v463_v5, %v514_v34  ;;  %v2157_v29 = vld [vmem:[#allocation8 + $0x4c] ss:$12 sps:$4 sm:$0xff]   ;;  %v2161_v32 = vld [vmem:[#allocation8 + $0x64] ss:$12 sps:$4 sm:$0xff]   ;;  %v2165_v34 = vld [vmem:[#allocation8 + $0x7c] ss:$12 sps:$4 sm:$0xff]  }
 0x13a   : > { %v489_v38 = vpop.xlane.xlu0 %488  ;;  %v491_v39 = vpop.xlane.xlu1 %490  ;;  %2008 = vmatpush3.bf16.msra.mxu1 %v2159_v23  ;;  %v2164_v33 = vld [vmem:[#allocation8 + $0x60] ss:$12 sps:$4 sm:$0xff]  }
 0x13b   : > { %v515_v40 = vmul.f32 0.0078125, %v489_v38  ;;  %v545_v41 = vmul.f32 %v2820_v35, %v2820_v35  ;;  %v516_v42 = vmul.f32 0.0078125, %v491_v39  ;;  %v546_v45 = vmul.f32 %v2822_v36, %v2822_v36  ;;  %2009 = vmatprep.subr.bf16.mxu1 %v2163_v25 }
 0x13d   : > { %v2828_v43 = vsub.f32 %v464_v6, %v515_v40  ;;  %563 = vadd.xlane.f32.xlu1 %v544_v37  ;;  %565 = vadd.xlane.f32.xlu0 %v545_v41  ;;  %v2830_v44 = vsub.f32 %v465_v7, %v516_v42  ;;  %v2168_v37 = vld [vmem:[#allocation8 + $0x78] ss:$12 sps:$4 sm:$0xff]  }
 0x13e   : > { %v493_v46 = vpop.xlane.xlu0 %492  ;;  %v495_v47 = vpop.xlane.xlu1 %494  ;;  %2010 = vmatpush3.bf16.msra.mxu1 %v2163_v25 }
 0x13f   : > { %v517_v48 = vmul.f32 0.0078125, %v493_v46  ;;  %v547_v49 = vmul.f32 %v2828_v43, %v2828_v43  ;;  %v518_v50 = vmul.f32 0.0078125, %v495_v47  ;;  %v548_v53 = vmul.f32 %v2830_v44, %v2830_v44  ;;  %2011 = vmatprep.subr.bf16.mxu1 %v2167_v30 }
 0x141   : > { %v2836_v51 = vsub.f32 %v466_v8, %v517_v48  ;;  %567 = vadd.xlane.f32.xlu1 %v546_v45  ;;  %569 = vadd.xlane.f32.xlu0 %v547_v49  ;;  %v2838_v52 = vsub.f32 %v467_v9, %v518_v50 }
 0x142   : > { %v497_v54 = vpop.xlane.xlu0 %496  ;;  %v499_v55 = vpop.xlane.xlu1 %498  ;;  %2012 = vmatpush3.bf16.msra.mxu1 %v2167_v30 }
 0x143   : > { %v519_v56 = vmul.f32 0.0078125, %v497_v54  ;;  %v549_v57 = vmul.f32 %v2836_v51, %v2836_v51  ;;  %v520_v58 = vmul.f32 0.0078125, %v499_v55  ;;  %v550_v61 = vmul.f32 %v2838_v52, %v2838_v52 }
 0x145   : > { %v2844_v59 = vsub.f32 %v468_v10, %v519_v56  ;;  %571 = vadd.xlane.f32.xlu1 %v548_v53  ;;  %573 = vadd.xlane.f32.xlu0 %v549_v57  ;;  %v2847_v60 = vsub.f32 %v2787_v11, %v520_v58  ;;  %v2169_v57 = vld [vmem:[#allocation8 + $0x94] ss:$12 sps:$4 sm:$0xff]  }
 0x146   : > { %v501_v62 = vpop.xlane.xlu0 %500  ;;  %v503_v63 = vpop.xlane.xlu1 %502 }
 0x147   : > { %v521_v0 = vmul.f32 0.0078125, %v501_v62  ;;  %v551_v1 = vmul.f32 %v2844_v59, %v2844_v59  ;;  %v522_v2 = vmul.f32 0.0078125, %v503_v63  ;;  %v552_v5 = vmul.f32 %v2847_v60, %v2847_v60  ;;  %v2171_v62 = vld [vmem:[#allocation8 + $0x68] ss:$12 sps:$4 sm:$0xff]   ;;  %v2172_v63 = vld [vmem:[#allocation8 + $0x90] ss:$12 sps:$4 sm:$0xff]  }
 0x148   : > { %2013 = vmatprep.subr.bf16.mxu1 %v2171_v62 }
 0x149   : > { %v2854_v3 = vsub.f32 %v2791_v12, %v521_v0  ;;  %575 = vadd.xlane.f32.xlu1 %v550_v61  ;;  %577 = vadd.xlane.f32.xlu0 %v551_v1  ;;  %v2857_v4 = vsub.f32 %v2794_v13, %v522_v2  ;;  %v2878_v2 = vld [vmem:[%s3294_s3] ss:$0 sm:$0xff]  ;;  %s1445_s3 = scalar_lea.sflag [#allocation4], %s2757_s20 }
 0x14a   : > { %v505_v6 = vpop.xlane.xlu0 %504  ;;  %v507_v7 = vpop.xlane.xlu1 %506  ;;  %2014 = vmatpush3.bf16.msra.mxu1 %v2171_v62 }
 0x14b   : > { %v523_v8 = vmul.f32 0.0078125, %v505_v6  ;;  %v553_v9 = vmul.f32 %v2854_v3, %v2854_v3  ;;  %v524_v10 = vmul.f32 0.0078125, %v507_v7  ;;  %v554_v13 = vmul.f32 %v2857_v4, %v2857_v4 }
 0x14d   : > { %v2864_v11 = vsub.f32 %v2799_v14, %v523_v8  ;;  %579 = vadd.xlane.f32.xlu1 %v552_v5  ;;  %581 = vadd.xlane.f32.xlu0 %v553_v9  ;;  %v2867_v12 = vsub.f32 %v2802_v15, %v524_v10  ;;  %v2149_v14 = vld [vmem:[#allocation8] ss:$12 sps:$4 sm:$0xff]   ;;  %v2152_v15 = vld [vmem:[#allocation8 + $0x18] ss:$12 sps:$4 sm:$0xff]  }
 0x14e   : > { %995 = vmatpush1.bf16.msra.mxu0 %v2149_v14  ;;  %v2173_v8 = vld [vmem:[#allocation8 + $0xac] ss:$12 sps:$4 sm:$0xff]  }
 0x14f   : > { %v555_v16 = vmul.f32 %v2864_v11, %v2864_v11  ;;  %v556_v17 = vmul.f32 %v2867_v12, %v2867_v12  ;;  %996 = vmatprep.subr.bf16.mxu0 %v2150_v19  ;;  %v2884_v19 = vld [vmem:[%s3295_s4] ss:$0 sm:$0xff]  ;;  %s2329_s4 = sshll.u32 %s2487_s27, 4  ;;  %s2330_s4 = int_to_ptr.vmem [resolvable:$false] %s2329_s4 }
 0x150   : > { %s2331_s8 = scalar_lea.vmem %s2330_s4, 2048  ;;  %p2332_p0 = scmp.lt.s32.totalorder %s3110_s16, %s2330_s4 }
 0x151   : > { %583 = vadd.xlane.f32.xlu1 %v554_v13  ;;  %585 = vadd.xlane.f32.xlu0 %v555_v16  ;;  %v2175_v16 = vld [vmem:[#allocation8 + $0x80] ss:$12 sps:$4 sm:$0xff]   ;;  %p2333_p2 = scmp.lt.s32.totalorder %s2331_s8, %s2325_s12 }
 0x152   : > { %997 = vmatpush1.bf16.msra.mxu0 %v2152_v15  ;;  %2015 = vmatprep.subr.bf16.mxu1 %v2175_v16 }
 0x153   : > { %998 = vmatprep.subr.bf16.mxu0 %v2153_v24  ;;  %2016 = vmatpush3.bf16.msra.mxu1 %v2175_v16  ;;  %p2334_p4 = por %p2333_p2, %p2332_p0 }
 0x155   : > { %587 = vadd.xlane.f32.xlu1 %v556_v17  ;;  %v2176_v17 = vld [vmem:[#allocation8 + $0xa8] ss:$12 sps:$4 sm:$0xff]   ;;  %p2335_p8 = pnand %p2334_p4, %p2328_p9 }
 0x156   : > { %999 = vmatpush1.bf16.msra.mxu0 %v2156_v26 }
 0x157   : > { %1000 = vmatprep.subr.bf16.mxu0 %v2157_v29 }
 0x15a   : > { %1001 = vmatpush1.bf16.msra.mxu0 %v2160_v31  ;;  %v2485_v31 = vmov 0  }
 0x15b   : > { %1002 = vmatprep.subr.bf16.mxu0 %v2161_v32  ;;  %1026 = vmatprep.mubr.bf16.mxu0 %v2485_v31  ;;  %v2177_v32 = vld [vmem:[#allocation8 + $0x98] ss:$12 sps:$4 sm:$0xff]  }
 0x15c   : > { %2017 = vmatprep.subr.bf16.mxu1 %v2177_v32 }
 0x15d   : > { %2018 = vmatpush3.bf16.msra.mxu1 %v2177_v32 }
 0x15e   : > { %1003 = vmatpush1.bf16.msra.mxu0 %v2164_v33 }
 0x15f   : > { %1004 = vmatprep.subr.bf16.mxu0 %v2165_v34 }
 0x162   : > { %1005 = vmatpush1.bf16.msra.mxu0 %v2168_v37 }
 0x163   : > { %1006 = vmatprep.subr.bf16.mxu0 %v2169_v57 }
 0x166   : > { %1007 = vmatpush1.bf16.msra.mxu0 %v2172_v63 }
 0x167   : > { %1008 = vmatprep.subr.bf16.mxu0 %v2173_v8 }
 0x16a   : > { %1009 = vmatpush1.bf16.msra.mxu0 %v2176_v17 }
 0x1c2   : > { %v558_v38 = vpop.xlane.xlu0 %557 }
 0x1c3   : > { %v589_v39 = vmul.f32 0.0078125, %v558_v38 }
 0x1c5   : > { %v605_v40 = vadd.f32 1e-05, %v589_v39 }
 0x1c6   : > { %v560_v41 = vpop.xlane.xlu1 %559  ;;  %v562_v42 = vpop.xlane.xlu0 %561 }
 0x1c7   : > { %2179 = vrsqrt.f32 %v605_v40  ;;  %v590_v45 = vmul.f32 0.0078125, %v560_v41  ;;  %v591_v46 = vmul.f32 0.0078125, %v562_v42  ;;  %v2178_v41 = vld [vmem:[#allocation8 + $0xb0] ss:$12 sps:$4 sm:$0xff]  }
 0x1c8   : > { %2019 = vmatprep.subr.bf16.mxu1 %v2178_v41 }
 0x1c9   : > { %v606_v47 = vadd.f32 1e-05, %v590_v45  ;;  %v607_v48 = vadd.f32 1e-05, %v591_v46  ;;  %2020 = vmatpush3.bf16.msra.mxu1 %v2178_v41 }
 0x1ca   : > { %v564_v49 = vpop.xlane.xlu1 %563  ;;  %v566_v50 = vpop.xlane.xlu0 %565 }
 0x1cb   : > { %2181 = vrsqrt.f32 %v606_v47  ;;  %v592_v53 = vmul.f32 0.0078125, %v564_v49  ;;  %v593_v54 = vmul.f32 0.0078125, %v566_v50 }
 0x1cc   : > { %2183 = vrsqrt.f32 %v607_v48 }
 0x1cd   : > { %v608_v55 = vadd.f32 1e-05, %v592_v53  ;;  %v609_v56 = vadd.f32 1e-05, %v593_v54 }
 0x1ce   : > { %v568_v58 = vpop.xlane.xlu1 %567  ;;  %v570_v61 = vpop.xlane.xlu0 %569 }
 0x1cf   : > { %2185 = vrsqrt.f32 %v608_v55  ;;  %v594_v0 = vmul.f32 0.0078125, %v568_v58  ;;  %v595_v1 = vmul.f32 0.0078125, %v570_v61 }
 0x1d0   : > { %2187 = vrsqrt.f32 %v609_v56 }
 0x1d1   : > { %v2180_v5 = vpop.eup %2179  ;;  %v610_v6 = vadd.f32 1e-05, %v594_v0  ;;  %v611_v7 = vadd.f32 1e-05, %v595_v1 }
 0x1d2   : > { %v572_v9 = vpop.xlane.xlu1 %571  ;;  %v574_v10 = vpop.xlane.xlu0 %573  ;;  %v637_v13 = vmul.f32 %v2180_v5, %v2806_v20 }
 0x1d3   : > { %2189 = vrsqrt.f32 %v610_v6  ;;  %v596_v18 = vmul.f32 0.0078125, %v572_v9  ;;  %v597_v14 = vmul.f32 0.0078125, %v574_v10 }
 0x1d4   : > { %2191 = vrsqrt.f32 %v611_v7  ;;  %v659_v22 = vmul.f32 %v2878_v2, %v637_v13 }
 0x1d5   : > { %v2182_v23 = vpop.eup %2181  ;;  %v612_v15 = vadd.f32 1e-05, %v596_v18  ;;  %v613_v24 = vadd.f32 1e-05, %v597_v14 }
 0x1d6   : > { %v2184_v20 = vpop.eup %2183  ;;  %v576_v25 = vpop.xlane.xlu1 %575  ;;  %v2888_v29 = vadd.f32 %v2884_v19, %v659_v22  ;;  %v638_v30 = vmul.f32 %v2182_v23, %v2812_v27 }
 0x1d7   : > { %v578_v26 = vpop.xlane.xlu0 %577  ;;  %2193 = vrsqrt.f32 %v612_v15  ;;  %v598_v33 = vmul.f32 0.0078125, %v576_v25  ;;  %v639_v37 = vmul.f32 %v2184_v20, %v2808_v21 }
 0x1d8   : > { %v599_v34 = vmul.f32 0.0078125, %v578_v26  ;;  %2195 = vrsqrt.f32 %v613_v24  ;;  %729 = vrot.lane.b32.xlu0 %v2888_v29, %s3265_s24  ;;  %v660_v38 = vmul.f32 %v2878_v2, %v638_v30 }
 0x1d9   : > { %v2186_v39 = vpop.eup %2185  ;;  %v614_v40 = vadd.f32 1e-05, %v598_v33  ;;  %v661_v21 = vmul.f32 %v2878_v2, %v639_v37 }
 0x1da   : > { %v615_v27 = vadd.f32 1e-05, %v599_v34  ;;  %v2188_v42 = vpop.eup %2187  ;;  %v580_v45 = vpop.xlane.xlu1 %579  ;;  %v2897_v47 = vadd.f32 %v2884_v19, %v660_v38  ;;  %v640_v48 = vmul.f32 %v2186_v39, %v2814_v28 }
 0x1db   : > { %v582_v46 = vpop.xlane.xlu0 %581  ;;  %2197 = vrsqrt.f32 %v614_v40  ;;  %v600_v49 = vmul.f32 0.0078125, %v580_v45  ;;  %v641_v53 = vmul.f32 %v2188_v42, %v2820_v35  ;;  %v2905_v62 = vadd.f32 %v2884_v19, %v661_v21 }
 0x1dc   : > { %v601_v50 = vmul.f32 0.0078125, %v582_v46  ;;  %2199 = vrsqrt.f32 %v615_v27  ;;  %731 = vrot.lane.b32.xlu1 %v2897_v47, %s3265_s24  ;;  %v662_v63 = vmul.f32 %v2878_v2, %v640_v48 }
 0x1dd   : > { %v2190_v54 = vpop.eup %2189  ;;  %v616_v55 = vadd.f32 1e-05, %v600_v49  ;;  %v663_v28 = vmul.f32 %v2878_v2, %v641_v53 }
 0x1de   : > { %v617_v56 = vadd.f32 1e-05, %v601_v50  ;;  %v2192_v57 = vpop.eup %2191  ;;  %v584_v58 = vpop.xlane.xlu1 %583  ;;  %v642_v0 = vmul.f32 %v2190_v54, %v2822_v36  ;;  %v2920_v16 = vadd.f32 %v2884_v19, %v662_v63 }
 0x1df   : > { %v586_v61 = vpop.xlane.xlu0 %585  ;;  %2201 = vrsqrt.f32 %v616_v55  ;;  %v602_v1 = vmul.f32 0.0078125, %v584_v58  ;;  %v643_v35 = vmul.f32 %v2192_v57, %v2828_v43  ;;  %v2914_v6 = vadd.f32 %v2884_v19, %v663_v28  ;;  %v697_v57 = vld [vmem:[#allocation5] sm:$0xff]  ;;  %v698_v58 = vld [vmem:[#allocation5 + $0x8] sm:$0xff] }
 0x1e0   : > { %v603_v5 = vmul.f32 0.0078125, %v586_v61  ;;  %2203 = vrsqrt.f32 %v617_v56  ;;  %733 = vrot.lane.b32.xlu1 %v2905_v62, %s3265_s24  ;;  %v664_v43 = vmul.f32 %v2878_v2, %v642_v0  ;;  %v762_v61 = vld [vmem:[#allocation7 + $0x8] sm:$0xff]  ;;  %v713_v0 = vmul.f32 %v697_v57, %v2888_v29 }
 0x1e1   : > { %v2194_v7 = vpop.eup %2193  ;;  %v618_v8 = vadd.f32 1e-05, %v602_v1  ;;  %v665_v10 = vmul.f32 %v2878_v2, %v643_v35  ;;  %737 = vrot.lane.b32.xlu0 %v2914_v6, %s3265_s24 }
 0x1e2   : > { %v619_v9 = vadd.f32 1e-05, %v603_v5  ;;  %v2196_v13 = vpop.eup %2195  ;;  %v588_v36 = vpop.xlane.xlu1 %587  ;;  %v644_v17 = vmul.f32 %v2194_v7, %v2830_v44  ;;  %v2934_v44 = vadd.f32 %v2884_v19, %v664_v43  ;;  %v763_v7 = vld [vmem:[#allocation7 + $0x10] sm:$0xff] }
 0x1e3   : > { %2205 = vrsqrt.f32 %v618_v8  ;;  %v604_v18 = vmul.f32 0.0078125, %v588_v36  ;;  %v2925_v14 = vadd.f32 %v2884_v19, %v665_v10  ;;  %v645_v22 = vmul.f32 %v2196_v13, %v2836_v51  ;;  %v700_v13 = vld [vmem:[#allocation5 + $0x18] sm:$0xff] }
 0x1e4   : > { %2207 = vrsqrt.f32 %v619_v9  ;;  %735 = vrot.lane.b32.xlu1 %v2920_v16, %s3265_s24  ;;  %v666_v25 = vmul.f32 %v2878_v2, %v644_v17  ;;  %v699_v9 = vld [vmem:[#allocation5 + $0x10] sm:$0xff]  ;;  %v764_v36 = vld [vmem:[#allocation7 + $0x18] sm:$0xff]  ;;  %v765_v17 = vld [vmem:[#allocation7 + $0x20] sm:$0xff] }
 0x1e5   : > { %v2198_v23 = vpop.eup %2197  ;;  %v620_v15 = vadd.f32 1e-05, %v604_v18  ;;  %v667_v24 = vmul.f32 %v2878_v2, %v645_v22  ;;  %741 = vrot.lane.b32.xlu0 %v2925_v14, %s3265_s24  ;;  %v715_v29 = vmul.f32 %v699_v9, %v2905_v62 }
 0x1e6   : > { %v2200_v20 = vpop.eup %2199  ;;  %v646_v26 = vmul.f32 %v2198_v23, %v2838_v52  ;;  %v2948_v37 = vadd.f32 %v2884_v19, %v666_v25  ;;  %v701_v23 = vld [vmem:[#allocation5 + $0x20] sm:$0xff] }
 0x1e7   : > { %2209 = vrsqrt.f32 %v620_v15  ;;  %v2939_v51 = vadd.f32 %v2884_v19, %v667_v24  ;;  %v647_v30 = vmul.f32 %v2200_v20, %v2844_v59  ;;  %v702_v24 = vld [vmem:[#allocation5 + $0x28] sm:$0xff] }
 0x1e8   : > { %739 = vrot.lane.b32.xlu1 %v2934_v44, %s3265_s24  ;;  %v668_v52 = vmul.f32 %v2878_v2, %v646_v26  ;;  %v766_v20 = vld [vmem:[#allocation7 + $0x28] sm:$0xff] }
 0x1e9   : > { %v2202_v32 = vpop.eup %2201  ;;  %v669_v33 = vmul.f32 %v2878_v2, %v647_v30  ;;  %745 = vrot.lane.b32.xlu0 %v2939_v51, %s3265_s24 }
 0x1ea   : > { %v2204_v34 = vpop.eup %2203  ;;  %v648_v38 = vmul.f32 %v2202_v32, %v2847_v60  ;;  %v2962_v42 = vadd.f32 %v2884_v19, %v668_v52  ;;  %v767_v32 = vld [vmem:[#allocation7 + $0x30] sm:$0xff]  ;;  %v718_v52 = vmul.f32 %v702_v24, %v2934_v44 }
 0x1eb   : > { %v2953_v39 = vadd.f32 %v2884_v19, %v669_v33  ;;  %v649_v59 = vmul.f32 %v2204_v34, %v2854_v3  ;;  %v717_v34 = vmul.f32 %v701_v23, %v2914_v6 }
 0x1ec   : > { %743 = vrot.lane.b32.xlu1 %v2948_v37, %s3265_s24  ;;  %v670_v60 = vmul.f32 %v2878_v2, %v648_v38 }
 0x1ed   : > { %v2206_v40 = vpop.eup %2205  ;;  %v671_v27 = vmul.f32 %v2878_v2, %v649_v59  ;;  %749 = vrot.lane.b32.xlu0 %v2953_v39, %s3265_s24 }
 0x1ee   : > { %v2208_v41 = vpop.eup %2207  ;;  %v650_v45 = vmul.f32 %v2206_v40, %v2857_v4  ;;  %v2976_v49 = vadd.f32 %v2884_v19, %v670_v60  ;;  %v703_v40 = vld [vmem:[#allocation5 + $0x30] sm:$0xff] }
 0x1ef   : > { %v2967_v46 = vadd.f32 %v2884_v19, %v671_v27  ;;  %v651_v3 = vmul.f32 %v2208_v41, %v2864_v11  ;;  %v704_v27 = vld [vmem:[#allocation5 + $0x38] sm:$0xff] }
 0x1f0   : > { %747 = vrot.lane.b32.xlu1 %v2962_v42, %s3265_s24  ;;  %v672_v50 = vmul.f32 %v2878_v2, %v650_v45  ;;  %v720_v6 = vmul.f32 %v704_v27, %v2948_v37 }
 0x1f1   : > { %v2210_v21 = vpop.eup %2209  ;;  %v673_v48 = vmul.f32 %v2878_v2, %v651_v3  ;;  %753 = vrot.lane.b32.xlu0 %v2967_v46, %s3265_s24  ;;  %v769_v3 = vld [vmem:[#allocation7 + $0x40] sm:$0xff] }
 0x1f2   : > { %v652_v4 = vmul.f32 %v2210_v21, %v2867_v12  ;;  %v2988_v11 = vadd.f32 %v2884_v19, %v672_v50  ;;  %v761_v12 = vld [vmem:[#allocation7] sm:$0xff] }
 0x1f3   : > { %v2981_v53 = vadd.f32 %v2884_v19, %v673_v48  ;;  %v719_v48 = vmul.f32 %v703_v40, %v2925_v14 }
 0x1f4   : > { %751 = vrot.lane.b32.xlu1 %v2976_v49, %s3265_s24  ;;  %v674_v54 = vmul.f32 %v2878_v2, %v652_v4  ;;  %v714_v2 = vmul.f32 %v698_v58, %v2897_v47  ;;  %v716_v47 = vmul.f32 %v700_v13, %v2920_v16  ;;  %v768_v16 = vld [vmem:[#allocation7 + $0x38] sm:$0xff]  ;;  %v705_v4 = vld [vmem:[#allocation5 + $0x40] sm:$0xff] }
 0x1f5   : > { %757 = vrot.lane.b32.xlu0 %v2981_v53, %s3265_s24 }
 0x1f6   : > { %v2994_v55 = vadd.f32 %v2884_v19, %v674_v54 }
 0x1f8   : > { %755 = vrot.lane.b32.xlu1 %v2988_v11, %s3265_s24 }
 0x1fc   : > { %759 = vrot.lane.b32.xlu1 %v2994_v55, %s3265_s24  ;;  %s3297_s24 = sld [smem:[#allocation27_spill]] }
 0x202   : > { %s3129_s0 = scalar_lea.hbm %s3297_s24, %s1845_s22 }
 0x24a   : > { %v730_v56 = vpop.permute.xlu0 %729 }
 0x24b   : > { %v777_v28 = vmul.f32 %v761_v12, %v730_v56  ;;  %v706_v12 = vld [vmem:[#allocation5 + $0x48] sm:$0xff] }
 0x24c   : > { %v770_v56 = vld [vmem:[#allocation7 + $0x48] sm:$0xff] }
 0x24d   : > { %v793_v5 = vadd.f32 %v777_v28, %v713_v0  ;;  %v771_v28 = vld [vmem:[#allocation7 + $0x50] sm:$0xff]  ;;  %v721_v0 = vmul.f32 %v705_v4, %v2939_v51 }
 0x24e   : > { %v732_v63 = vpop.permute.xlu1 %731 }
 0x24f   : > { %v778_v1 = vmul.f32 %v762_v61, %v732_v63 }
 0x251   : > { %v794_v35 = vadd.f32 %v778_v1, %v714_v2  ;;  %v722_v2 = vmul.f32 %v706_v12, %v2962_v42 }
 0x252   : > { %v734_v19 = vpop.permute.xlu1 %733 }
 0x253   : > { %v809_v8 = vpack.c.bf16 %v794_v35, %v793_v5  ;;  %v738_v10 = vpop.permute.xlu0 %737  ;;  %v779_v43 = vmul.f32 %v763_v7, %v734_v19  ;;  %v707_v5 = vld [vmem:[#allocation5 + $0x50] sm:$0xff]  ;;  %v708_v35 = vld [vmem:[#allocation5 + $0x58] sm:$0xff] }
 0x254   : > { %v781_v26 = vmul.f32 %v765_v17, %v738_v10  ;;  %v772_v7 = vld [vmem:[#allocation7 + $0x58] sm:$0xff]  ;;  %v773_v10 = vld [vmem:[#allocation7 + $0x60] sm:$0xff]  ;;  %v724_v51 = vmul.f32 %v708_v35, %v2976_v49 }
 0x255   : > { %1027 = vmatmul.mubr.bf16.vlgmr.msra.gmra.mrb[0].mxu0 %v809_v8  ;;  %2021 = vmatprep.mubr.bf16.mxu1 %v809_v8  ;;  %v795_v25 = vadd.f32 %v779_v43, %v715_v29  ;;  %v709_v17 = vld [vmem:[#allocation5 + $0x60] sm:$0xff]  ;;  %v774_v29 = vld [vmem:[#allocation7 + $0x68] sm:$0xff]  ;;  %v712_v49 = vld [vmem:[#allocation5 + $0x78] sm:$0xff] }
 0x256   : > { %v736_v18 = vpop.permute.xlu1 %735  ;;  %1036 = vmatprep.mubr.bf16.mxu0 %v2485_v31  ;;  %v797_v41 = vadd.f32 %v781_v26, %v717_v34 }
 0x257   : > { %v780_v22 = vmul.f32 %v764_v36, %v736_v18  ;;  %v742_v15 = vpop.permute.xlu0 %741  ;;  %v723_v36 = vmul.f32 %v707_v5, %v2953_v39  ;;  %v710_v18 = vld [vmem:[#allocation5 + $0x68] sm:$0xff] }
 0x258   : > { %v783_v60 = vmul.f32 %v767_v32, %v742_v15  ;;  %v775_v15 = vld [vmem:[#allocation7 + $0x70] sm:$0xff]  ;;  %v726_v26 = vmul.f32 %v710_v18, %v2988_v11 }
 0x259   : > { %v796_v30 = vadd.f32 %v780_v22, %v716_v47  ;;  %v711_v32 = vld [vmem:[#allocation5 + $0x70] sm:$0xff] }
 0x25a   : > { %v740_v33 = vpop.permute.xlu1 %739  ;;  %v799_v57 = vadd.f32 %v783_v60, %v719_v48  ;;  %v727_v40 = vmul.f32 %v711_v32, %v2981_v53  ;;  %v851_v53 = vlaneseq }
 0x25b   : > { %v782_v38 = vmul.f32 %v766_v20, %v740_v33  ;;  %v810_v59 = vpack.c.bf16 %v796_v30, %v795_v25  ;;  %v746_v62 = vpop.permute.xlu0 %745  ;;  %v725_v25 = vmul.f32 %v709_v17, %v2967_v46  ;;  %v776_v33 = vld [vmem:[#allocation7 + $0x78] sm:$0xff] }
 0x25c   : > { %v785_v58 = vmul.f32 %v769_v3, %v746_v62  ;;  %v728_v62 = vmul.f32 %v712_v49, %v2994_v55  ;;  %v852_v55 = vshrl.u32 %v851_v53, 7 }
 0x25d   : > { %v798_v45 = vadd.f32 %v782_v38, %v718_v52  ;;  %1037 = vmatmul.mubr.bf16.gmra.mrb[4].mxu0 %v810_v59  ;;  %2022 = vmatmul.mubr.bf16.vlgmr.msra.gmra.mrb[0].mxu1 %v810_v59 }
 0x25e   : > { %v744_v21 = vpop.permute.xlu1 %743  ;;  %1046 = vmatprep.mubr.bf16.mxu0 %v2485_v31  ;;  %v801_v19 = vadd.f32 %v785_v58, %v721_v0  ;;  %v853_v60 = vsub.s32 0, %v852_v55  ;;  %v857_v3 = vsub.s32 1, %v852_v55  ;;  %v861_v12 = vsub.s32 2, %v852_v55 }
 0x25f   : > { %v784_v44 = vmul.f32 %v768_v16, %v744_v21  ;;  %v811_v50 = vpack.c.bf16 %v798_v45, %v797_v41  ;;  %v750_v54 = vpop.permute.xlu0 %749  ;;  %v849_v45 = vld [vmem:[%s3252_s6] sm:$0x7] }
 0x260   : > { %v787_v8 = vmul.f32 %v771_v28, %v750_v54  ;;  %v3024_v21 = vrot.slane %v849_v45, %v853_v60  ;;  %v3039_v28 = vrot.slane %v849_v45, %v861_v12 }
 0x261   : > { %v800_v61 = vadd.f32 %v784_v44, %v720_v6  ;;  %2025 = vmatprep.mubr.bf16.mxu1 %v811_v50  ;;  %v3026_v6 = vrot.slane %v849_v45, %v857_v3 }
 0x262   : > { %v748_v63 = vpop.permute.xlu1 %747  ;;  %v803_v47 = vadd.f32 %v787_v8, %v723_v36 }
 0x263   : > { %v786_v1 = vmul.f32 %v770_v56, %v748_v63  ;;  %v812_v14 = vpack.c.bf16 %v800_v61, %v799_v57  ;;  %v754_v37 = vpop.permute.xlu0 %753 }
 0x264   : > { %v789_v22 = vmul.f32 %v773_v10, %v754_v37 }
 0x265   : > { %v802_v9 = vadd.f32 %v786_v1, %v722_v2  ;;  %1047 = vmatmul.mubr.bf16.gmra.mrb[8].mxu0 %v811_v50  ;;  %2026 = vmatmul.mubr.bf16.gmra.mrb[4].mxu1 %v812_v14 }
 0x266   : > { %v752_v13 = vpop.permute.xlu1 %751  ;;  %1056 = vmatprep.mubr.bf16.mxu0 %v2485_v31  ;;  %v805_v34 = vadd.f32 %v789_v22, %v725_v25 }
 0x267   : > { %v788_v42 = vmul.f32 %v772_v7, %v752_v13  ;;  %v813_v43 = vpack.c.bf16 %v802_v9, %v801_v19  ;;  %v758_v24 = vpop.permute.xlu0 %757 }
 0x268   : > { %v791_v52 = vmul.f32 %v775_v15, %v758_v24 }
 0x269   : > { %v804_v23 = vadd.f32 %v788_v42, %v724_v51  ;;  %2029 = vmatprep.mubr.bf16.mxu1 %v813_v43 }
 0x26a   : > { %v756_v20 = vpop.permute.xlu1 %755  ;;  %v807_v11 = vadd.f32 %v791_v52, %v727_v40 }
 0x26b   : > { %v790_v30 = vmul.f32 %v774_v29, %v756_v20  ;;  %v814_v39 = vpack.c.bf16 %v804_v23, %v803_v47 }
 0x26d   : > { %v806_v38 = vadd.f32 %v790_v30, %v726_v26  ;;  %1057 = vmatmul.mubr.bf16.gmra.mrb[12].mxu0 %v812_v14  ;;  %2030 = vmatmul.mubr.bf16.gmra.mrb[8].mxu1 %v814_v39 }
 0x26e   : > { %v760_v59 = vpop.permute.xlu1 %759  ;;  %1066 = vmatprep.mubr.bf16.mxu0 %v2485_v31 }
 0x26f   : > { %v792_v46 = vmul.f32 %v776_v33, %v760_v59  ;;  %v815_v27 = vpack.c.bf16 %v806_v38, %v805_v34 }
 0x271   : > { %v808_v16 = vadd.f32 %v792_v46, %v728_v62  ;;  %2033 = vmatprep.mubr.bf16.mxu1 %v815_v27 }
 0x273   : > { %v816_v41 = vpack.c.bf16 %v808_v16, %v807_v11 }
 0x275   : > { %1067 = vmatmul.mubr.bf16.gmra.mrb[16].mxu0 %v813_v43  ;;  %2034 = vmatmul.mubr.bf16.gmra.mrb[12].mxu1 %v816_v41 }
 0x276   : > { %1076 = vmatprep.mubr.bf16.mxu0 %v2485_v31 }
 0x27d   : > { %1077 = vmatmul.mubr.bf16.gmra.mrb[20].mxu0 %v814_v39 }
 0x27e   : > { %1086 = vmatprep.mubr.bf16.mxu0 %v2485_v31 }
 0x285   : > { %1087 = vmatmul.mubr.bf16.gmra.mrb[24].mxu0 %v815_v27 }
 0x286   : > { %1096 = vmatprep.mubr.bf16.mxu0 %v2485_v31 }
 0x28d   : > { %1097 = vmatmul.mubr.bf16.gmra.mrb[28].mxu0 %v816_v41 }
 0x328   : > { %v1028_v48 = vpop.f32.mrb[0].mxu0 }
 0x329   : > { %v1030_v44 = vpop.f32.mrb[1].mxu0  ;;  %v1029_v50 = vadd.f32 %v1028_v48, %v3024_v21 }
 0x32a   : > { %v1032_v31 = vpop.f32.mrb[2].mxu0  ;;  %v1031_v56 = vadd.f32 %v1030_v44, %v3026_v6 }
 0x32b   : > { %v1033_v4 = vadd.f32 %v1032_v31, %v3024_v21  ;;  %v1034_v54 = vpop.f32.mrb[3].mxu0 }
 0x32c   : > { %v1035_v57 = vadd.f32 %v1034_v54, %v3026_v6 }
 0x32d   : > { %v1851_v58 = vpack.c.bf16 %v1033_v4, %v1029_v50 }
 0x32e   : > { %v1891_v61 = vpack.c.bf16 %v1035_v57, %v1031_v56 }
 0x32f   : > { %1852 = vst [vmem:[%s3036_s26] sm:$0xff] %v1851_v58  }
 0x330   : > { %1892 = vst [vmem:[%s3042_s23] sm:$0xff] %v1891_v61   ;;  %v1038_v63 = vpop.f32.mrb[4].mxu0  ;;  %v2023_v0 = vpop.f32.mrb[0].mxu1 }
 0x331   : > { %v1040_v2 = vpop.f32.mrb[5].mxu0  ;;  %v1141_v1 = vpop.f32.mrb[1].mxu1  ;;  %v1039_v37 = vadd.f32 %v1038_v63, %v3024_v21  ;;  %v1150_v35 = vadd.f32 %v2023_v0, %v3039_v28 }
 0x332   : > { %v1042_v14 = vpop.f32.mrb[6].mxu0  ;;  %v2024_v5 = vpop.f32.mrb[2].mxu1  ;;  %v1041_v10 = vadd.f32 %v1040_v2, %v3026_v6  ;;  %v1142_v13 = vadd.f32 %v1141_v1, %v3039_v28 }
 0x333   : > { %v1043_v7 = vadd.f32 %v1042_v14, %v3024_v21  ;;  %v1153_v19 = vadd.f32 %v2024_v5, %v3039_v28  ;;  %v1044_v8 = vpop.f32.mrb[7].mxu0  ;;  %v1144_v9 = vpop.f32.mrb[3].mxu1 }
 0x334   : > { %v1045_v36 = vadd.f32 %v1044_v8, %v3026_v6  ;;  %v1145_v51 = vadd.f32 %v1144_v9, %v3039_v28 }
 0x335   : > { %v1856_v42 = vpack.c.bf16 %v1043_v7, %v1039_v37  ;;  %v1936_v43 = vpack.c.bf16 %v1153_v19, %v1150_v35 }
 0x336   : > { %v1896_v17 = vpack.c.bf16 %v1045_v36, %v1041_v10  ;;  %v1931_v18 = vpack.c.bf16 %v1145_v51, %v1142_v13 }
 0x337   : > { %1968 = vst [vmem:[%s3036_s26 + $0x8] sm:$0xff] %v1856_v42   ;;  %1982 = vst [vmem:[%s3055_s21 + $0x8] sm:$0xff] %v1936_v43  }
 0x338   : > { %1975 = vst [vmem:[%s3042_s23 + $0x8] sm:$0xff] %v1896_v17   ;;  %1932 = vst [vmem:[%s3055_s21] sm:$0xff] %v1931_v18   ;;  %v1048_v29 = vpop.f32.mrb[8].mxu0  ;;  %v2027_v47 = vpop.f32.mrb[4].mxu1 }
 0x339   : > { %v1050_v22 = vpop.f32.mrb[9].mxu0  ;;  %v1157_v23 = vpop.f32.mrb[5].mxu1  ;;  %v1049_v20 = vadd.f32 %v1048_v29, %v3024_v21  ;;  %v1166_v25 = vadd.f32 %v2027_v47, %v3039_v28 }
 0x33a   : > { %v1052_v15 = vpop.f32.mrb[10].mxu0  ;;  %v2028_v24 = vpop.f32.mrb[6].mxu1  ;;  %v1051_v49 = vadd.f32 %v1050_v22, %v3026_v6  ;;  %v1158_v33 = vadd.f32 %v1157_v23, %v3039_v28 }
 0x33b   : > { %v1053_v26 = vadd.f32 %v1052_v15, %v3024_v21  ;;  %v1169_v30 = vadd.f32 %v2028_v24, %v3039_v28  ;;  %v1054_v39 = vpop.f32.mrb[11].mxu0  ;;  %v1160_v32 = vpop.f32.mrb[7].mxu1 }
 0x33c   : > { %v1055_v34 = vadd.f32 %v1054_v39, %v3026_v6  ;;  %v1161_v52 = vadd.f32 %v1160_v32, %v3039_v28 }
 0x33d   : > { %v1861_v38 = vpack.c.bf16 %v1053_v26, %v1049_v20  ;;  %v1946_v59 = vpack.c.bf16 %v1169_v30, %v1166_v25 }
 0x33e   : > { %v1901_v40 = vpack.c.bf16 %v1055_v34, %v1051_v49  ;;  %v1941_v62 = vpack.c.bf16 %v1161_v52, %v1158_v33 }
 0x33f   : > { %1969 = vst [vmem:[%s3036_s26 + $0x10] sm:$0xff] %v1861_v38   ;;  %1984 = vst [vmem:[%s3055_s21 + $0x18] sm:$0xff] %v1946_v59  }
 0x340   : > { %1976 = vst [vmem:[%s3042_s23 + $0x10] sm:$0xff] %v1901_v40   ;;  %1983 = vst [vmem:[%s3055_s21 + $0x10] sm:$0xff] %v1941_v62   ;;  %v1058_v46 = vpop.f32.mrb[12].mxu0  ;;  %v2031_v27 = vpop.f32.mrb[8].mxu1 }
 0x341   : > { %v1060_v11 = vpop.f32.mrb[13].mxu0  ;;  %v1173_v16 = vpop.f32.mrb[9].mxu1  ;;  %v1059_v55 = vadd.f32 %v1058_v46, %v3024_v21  ;;  %v1182_v60 = vadd.f32 %v2031_v27, %v3039_v28 }
 0x342   : > { %v1062_v41 = vpop.f32.mrb[14].mxu0  ;;  %v2032_v53 = vpop.f32.mrb[10].mxu1  ;;  %v1061_v31 = vadd.f32 %v1060_v11, %v3026_v6  ;;  %v1174_v50 = vadd.f32 %v1173_v16, %v3039_v28 }
 0x343   : > { %v1063_v45 = vadd.f32 %v1062_v41, %v3024_v21  ;;  %v1185_v3 = vadd.f32 %v2032_v53, %v3039_v28  ;;  %v1064_v48 = vpop.f32.mrb[15].mxu0  ;;  %v1176_v44 = vpop.f32.mrb[11].mxu1 }
 0x344   : > { %v1065_v4 = vadd.f32 %v1064_v48, %v3026_v6  ;;  %v1177_v54 = vadd.f32 %v1176_v44, %v3039_v28 }
 0x345   : > { %v1866_v12 = vpack.c.bf16 %v1063_v45, %v1059_v55  ;;  %v1956_v56 = vpack.c.bf16 %v1185_v3, %v1182_v60 }
 0x346   : > { %v1906_v57 = vpack.c.bf16 %v1065_v4, %v1061_v31  ;;  %v1951_v58 = vpack.c.bf16 %v1177_v54, %v1174_v50 }
 0x347   : > { %1970 = vst [vmem:[%s3036_s26 + $0x18] sm:$0xff] %v1866_v12   ;;  %1986 = vst [vmem:[%s3055_s21 + $0x28] sm:$0xff] %v1956_v56  }
 0x348   : > { %1977 = vst [vmem:[%s3042_s23 + $0x18] sm:$0xff] %v1906_v57   ;;  %1985 = vst [vmem:[%s3055_s21 + $0x20] sm:$0xff] %v1951_v58   ;;  %v1068_v61 = vpop.f32.mrb[16].mxu0  ;;  %v2035_v63 = vpop.f32.mrb[12].mxu1 }
 0x349   : > { %v1070_v0 = vpop.f32.mrb[17].mxu0  ;;  %v1189_v2 = vpop.f32.mrb[13].mxu1  ;;  %v1069_v5 = vadd.f32 %v1068_v61, %v3024_v21  ;;  %v1198_v37 = vadd.f32 %v2035_v63, %v3039_v28 }
 0x34a   : > { %v1072_v1 = vpop.f32.mrb[18].mxu0  ;;  %v2036_v14 = vpop.f32.mrb[14].mxu1  ;;  %v1071_v9 = vadd.f32 %v1070_v0, %v3026_v6  ;;  %v1190_v10 = vadd.f32 %v1189_v2, %v3039_v28 }
 0x34b   : > { %v1073_v35 = vadd.f32 %v1072_v1, %v3024_v21  ;;  %v1201_v7 = vadd.f32 %v2036_v14, %v3039_v28  ;;  %v1074_v19 = vpop.f32.mrb[19].mxu0  ;;  %v1192_v8 = vpop.f32.mrb[15].mxu1 }
 0x34c   : > { %v1075_v13 = vadd.f32 %v1074_v19, %v3026_v6  ;;  %v1193_v36 = vadd.f32 %v1192_v8, %v3039_v28 }
 0x34d   : > { %v1871_v51 = vpack.c.bf16 %v1073_v35, %v1069_v5  ;;  %v1966_v42 = vpack.c.bf16 %v1201_v7, %v1198_v37 }
 0x34e   : > { %v1911_v43 = vpack.c.bf16 %v1075_v13, %v1071_v9  ;;  %v1961_v17 = vpack.c.bf16 %v1193_v36, %v1190_v10 }
 0x34f   : > { %1971 = vst [vmem:[%s3036_s26 + $0x20] sm:$0xff] %v1871_v51   ;;  %1988 = vst [vmem:[%s3055_s21 + $0x38] sm:$0xff] %v1966_v42  }
 0x350   : > { %1978 = vst [vmem:[%s3042_s23 + $0x20] sm:$0xff] %v1911_v43   ;;  %1987 = vst [vmem:[%s3055_s21 + $0x30] sm:$0xff] %v1961_v17   ;;  %v1078_v18 = vpop.f32.mrb[20].mxu0 }
 0x351   : > { %v1080_v29 = vpop.f32.mrb[21].mxu0  ;;  %v1079_v22 = vadd.f32 %v1078_v18, %v3024_v21 }
 0x352   : > { %v1082_v47 = vpop.f32.mrb[22].mxu0  ;;  %v1081_v28 = vadd.f32 %v1080_v29, %v3026_v6 }
 0x353   : > { %v1083_v23 = vadd.f32 %v1082_v47, %v3024_v21  ;;  %v1084_v15 = vpop.f32.mrb[23].mxu0 }
 0x354   : > { %v1085_v24 = vadd.f32 %v1084_v15, %v3026_v6 }
 0x355   : > { %v1876_v20 = vpack.c.bf16 %v1083_v23, %v1079_v22 }
 0x356   : > { %v1916_v25 = vpack.c.bf16 %v1085_v24, %v1081_v28 }
 0x357   : > { %1972 = vst [vmem:[%s3036_s26 + $0x28] sm:$0xff] %v1876_v20  }
 0x358   : > { %1979 = vst [vmem:[%s3042_s23 + $0x28] sm:$0xff] %v1916_v25   ;;  %v1088_v26 = vpop.f32.mrb[24].mxu0 }
 0x359   : > { %v1090_v30 = vpop.f32.mrb[25].mxu0  ;;  %v1089_v32 = vadd.f32 %v1088_v26, %v3024_v21 }
 0x35a   : > { %v1092_v39 = vpop.f32.mrb[26].mxu0  ;;  %v1091_v34 = vadd.f32 %v1090_v30, %v3026_v6 }
 0x35b   : > { %v1093_v49 = vadd.f32 %v1092_v39, %v3024_v21  ;;  %v1094_v33 = vpop.f32.mrb[27].mxu0 }
 0x35c   : > { %v1095_v52 = vadd.f32 %v1094_v33, %v3026_v6 }
 0x35d   : > { %v1881_v38 = vpack.c.bf16 %v1093_v49, %v1089_v32 }
 0x35e   : > { %v1921_v59 = vpack.c.bf16 %v1095_v52, %v1091_v34 }
 0x35f   : > { %1973 = vst [vmem:[%s3036_s26 + $0x30] sm:$0xff] %v1881_v38  }
 0x360   : > { %1980 = vst [vmem:[%s3042_s23 + $0x30] sm:$0xff] %v1921_v59   ;;  %v1098_v40 = vpop.f32.mrb[28].mxu0 }
 0x361   : > { %v1100_v62 = vpop.f32.mrb[29].mxu0  ;;  %v1099_v27 = vadd.f32 %v1098_v40, %v3024_v21 }
 0x362   : > { %v1102_v46 = vpop.f32.mrb[30].mxu0  ;;  %v1101_v41 = vadd.f32 %v1100_v62, %v3026_v6 }
 0x363   : > { %v1103_v11 = vadd.f32 %v1102_v46, %v3024_v21  ;;  %v1104_v16 = vpop.f32.mrb[31].mxu0 }
 0x364   : > { %v1105_v53 = vadd.f32 %v1104_v16, %v3026_v6 }
 0x365   : > { %v1886_v55 = vpack.c.bf16 %v1103_v11, %v1099_v27 }
 0x366   : > { %v1926_v60 = vpack.c.bf16 %v1105_v53, %v1101_v41 }
 0x367   : > { %1974 = vst [vmem:[%s3036_s26 + $0x38] sm:$0xff] %v1886_v55  }
 0x368   : > { %1981 = vst [vmem:[%s3042_s23 + $0x38] sm:$0xff] %v1926_v60  }
 0x369   : > { %2338 = shalt.err (!%p2335_p8)
}
 0x36a   : > { %s2339_s26 = scalar_lea.hbm %s3124_s7, 1024  ;;  %s2343_s17 = scalar_lea.hbm %s3296_s28, 2048 }
 0x36b   : > { %p2340_p12 = scmp.ne.s32.totalorder %s3124_s7, %s2339_s26  ;;  %p2344_p13 = scmp.lt.u32.totalorder %s3124_s7, %s3296_s28 }
 0x36c   : > { %p2345_p6 = scmp.lt.u32.totalorder %s2343_s17, %s2339_s26  ;;  %p2347_p5 = scmp.lt.u32.totalorder %s2339_s26, %s3124_s7 }
 0x36d   : > { %p2341_p1 = pnand %p2340_p12, %p2696_p10 }
 0x36e   : > { %p2346_p3 = por %p2345_p6, %p2344_p13 }
 0x36f   : > { %p2342_p11 = pneg %p2341_p1 }
 0x370   : > { %p2348_p7 = por %p2347_p5, %p2346_p3 }
 0x372   : > { %p2349_p9 = pnand %p2348_p7, %p2342_p11 }
 0x374   : > { %2352 = shalt.err (!%p2349_p9)
}
 0x375   : > { %s2488_s21 = smov 4   ;;  %s3299_s12 = smov 64  }
 0x376   : > { %2051 = dma.vmem_to_hbm [thread:$0]  (%p2696_p10), %s3110_s16, 1024, %s3124_s7, %s1445_s3, %s3299_s12, %s3299_s12, %s2488_s21  }
 0x377   : > { %s3300_s27 = sand.u32 1, %s2572_s15   ;;  %s2353_s26 = scalar_lea.vmem %s3113_s18, 1024 }
 0x378   : > { %s3169_s8 = scalar_lea.sflag [#allocation12], %s3300_s27  ;;  %p2354_p0 = scmp.ne.s32.totalorder %s3113_s18, %s2353_s26 }
 0x379   : > { %s2489_s23 = smov [#allocation11]  }
 0x37a   : > { %p2355_p2 = pnand %p2354_p0, %p2696_p10  ;;  %s2357_s22 = sshll.u32 %s2489_s23, 4  ;;  %s2358_s22 = int_to_ptr.vmem [resolvable:$false] %s2357_s22 }
 0x37b   : > { %s2359_s20 = scalar_lea.vmem %s2358_s22, 2048  ;;  %p2360_p8 = scmp.lt.s32.totalorder %s3113_s18, %s2358_s22 }
 0x37c   : > { %p2356_p4 = pneg %p2355_p2  ;;  %p2361_p12 = scmp.lt.s32.totalorder %s2359_s20, %s2353_s26 }
 0x37e   : > { %p2362_p1 = por %p2361_p12, %p2360_p8 }
 0x380   : > { %p2363_p11 = pnand %p2362_p1, %p2356_p4 }
 0x382   : > { %2366 = shalt.err (!%p2363_p11)
}
 0x383   : > { %s2367_s3 = scalar_lea.hbm %s3129_s0, 1024  ;;  %s2371_s7 = scalar_lea.hbm %s3297_s24, 2048 }
 0x384   : > { %p2368_p13 = scmp.ne.s32.totalorder %s3129_s0, %s2367_s3  ;;  %p2372_p5 = scmp.lt.u32.totalorder %s3129_s0, %s3297_s24 }
 0x385   : > { %p2373_p7 = scmp.lt.u32.totalorder %s2371_s7, %s2367_s3  ;;  %p2375_p0 = scmp.lt.u32.totalorder %s2367_s3, %s3129_s0 }
 0x386   : > { %p2369_p6 = pnand %p2368_p13, %p2696_p10 }
 0x387   : > { %p2374_p9 = por %p2373_p7, %p2372_p5 }
 0x388   : > { %p2370_p3 = pneg %p2369_p6 }
 0x389   : > { %p2376_p2 = por %p2375_p0, %p2374_p9 }
 0x38b   : > { %p2377_p4 = pnand %p2376_p2, %p2370_p3 }
 0x38d   : > { %2380 = shalt.err (!%p2377_p4)
}
 0x38e   : > { %2052 = dma.vmem_to_hbm [thread:$0]  (%p2696_p10), %s3113_s18, 1024, %s3129_s0, %s3169_s8, %s3299_s12, %s3299_s12, %s2488_s21  }
 0x38f   : > { %s2381_s4 = scalar_lea.vmem %s3131_s19, 1024  ;;  %s2490_s27 = smov [#allocation13]  }
 0x390   : > { %p2382_p8 = scmp.ne.s32.totalorder %s3131_s19, %s2381_s4  ;;  %s2385_s26 = sshll.u32 %s2490_s27, 4  ;;  %s2386_s26 = int_to_ptr.vmem [resolvable:$false] %s2385_s26 }
 0x391   : > { %s2387_s23 = scalar_lea.vmem %s2386_s26, 2048  ;;  %p2388_p11 = scmp.lt.s32.totalorder %s3131_s19, %s2386_s26 }
 0x392   : > { %p2383_p12 = pnand %p2382_p8, %p2696_p10  ;;  %p2389_p13 = scmp.lt.s32.totalorder %s2387_s23, %s2381_s4 }
 0x394   : > { %p2384_p1 = pneg %p2383_p12  ;;  %p2390_p6 = por %p2389_p13, %p2388_p11 }
 0x396   : > { %p2391_p3 = pnand %p2390_p6, %p2384_p1 }
 0x398   : > { %2394 = shalt.err (!%p2391_p3)
}
 0x399   : > { %s2395_s0 = scalar_lea.hbm %s3137_s2, 1024  ;;  %s2399_s20 = scalar_lea.hbm %s3298_s1, 2048 }
 0x39a   : > { %p2396_p5 = scmp.ne.s32.totalorder %s3137_s2, %s2395_s0  ;;  %p2400_p0 = scmp.lt.u32.totalorder %s3137_s2, %s3298_s1 }
 0x39b   : > { %p2401_p2 = scmp.lt.u32.totalorder %s2399_s20, %s2395_s0  ;;  %p2403_p8 = scmp.lt.u32.totalorder %s2395_s0, %s3137_s2 }
 0x39c   : > { %p2397_p7 = pnand %p2396_p5, %p2696_p10 }
 0x39d   : > { %p2402_p4 = por %p2401_p2, %p2400_p0 }
 0x39e   : > { %p2398_p9 = pneg %p2397_p7 }
 0x39f   : > { %p2404_p12 = por %p2403_p8, %p2402_p4 }
 0x3a1   : > { %p2405_p1 = pnand %p2404_p12, %p2398_p9 }
 0x3a3   : > { %2408 = shalt.err (!%p2405_p1)
}
 0x3a4   : > { %2053 = dma.vmem_to_hbm [thread:$0]  (%p2696_p10), %s3131_s19, 1024, %s3137_s2, %s3169_s8, %s3299_s12, %s3299_s12, %s2488_s21  }
 0x3a5 PF: > { %s3301_s16 = sld [smem:[#allocation19_spill]]  ;;  %s3302_s7 = sld [smem:[#allocation20_spill]] }
 0x3a6   : > { %p3304_p13 = scmp.ge.s32.totalorder %s2475_s14, 2 }
 0x3ab   : > { %s1521_s17 = sand.u32 1, %s3301_s16   ;;  %p3303_p11 = scmp.ne.s32.totalorder %s3302_s7, 0 }
 0x3ac   : > { %s1522_s9 = scalar_lea.sflag [#allocation4], %s1521_s17 }
 0x3ad   : > { %p2072_p6 = pnand %p3304_p13, %p3303_p11 }
 0x3af   : > { %2446 = dma.done.wait (!%p2072_p6), %s1522_s9, 1024  }
 0x3b0   : > { %2448 = vsyncadd (!%p2072_p6), %s1522_s9, 4294966272  ;;  %s3305_s29 = sadd.s32 4294967294, %s2475_s14  }
 0x3b1   : > { %s1530_s4 = sand.u32 1, %s3305_s29  }
 0x3b2   : > { %s1531_s27 = scalar_lea.sflag [#allocation12], %s1530_s4 }
 0x3b3   : > { %2450 = dma.done.wait (!%p2072_p6), %s1531_s27, 2048  }
 0x3b4   : > { %2452 = vsyncadd (!%p2072_p6), %s1531_s27, 4294965248  ;;  %s31_s14 = sadd.s32 1, %s2475_s14   ;;  %s3306_s2 = smov %s3313_s30 }
 0x3b5   : > { %p28_p10 = scmp.ge.s32.totalorder %s31_s14, 4   ;;  %s3307_s30 = smov %s2459_s10 }
 0x3b6   : > { %s3308_s10 = smov %s2463_s11  ;;  %s3309_s11 = smov %s2708_s25 }
 0x3b7   : > { %s3310_s12 = smov %s2471_s13  ;;  %s3311_s13 = smov %s3306_s2 }
 0x3b8   :  { %30 = sbr.rel (!%p28_p10) target bundleno = 19 (0x13), region = 139 }
 0x3bf   :  { %1545 = vsyncpa [#allocation3], 1 }
 0x3c0   :  { %1547 = vsyncpa [#allocation3 + $0x1], 1 }
 0x3c1   :  { %1548 = vsyncpa [#allocation6], 1 }
 0x3c2   :  { %1549 = vsyncpa [#allocation9], 1 }
 0x3c3   :  { %1550 = vsyncpa [#allocation4], 1 }
 0x3c4   :  { %1552 = vsyncpa [#allocation4 + $0x1], 1 }
 0x3c5   :  { %1553 = vsyncpa [#allocation12], 1 }
 0x3c6   :  { %1555 = vsyncpa [#allocation12 + $0x1], 1 }

</bundles_post_ra>
